<compile_context>
chip_gen: v7x
topology: tpu7x:2x2x1
jax: 0.10.0
libtpu: 0.0.40
codegen_flags: <defaults>
</compile_context>

<pallas_src>
import functools

import jax
import jax.numpy as jnp
from jax.experimental import pallas as pl
from jax.experimental.pallas import tpu as pltpu


# ----------------------------- kernels --------------------------------------


def _linear_act_fused_kernel(x_ref, w_ref, b_ref, o_ref, *, act):
    """Single K block: o = act(x @ w + b). No scratch, no reduction axis."""
    y = jnp.dot(x_ref[...], w_ref[...], preferred_element_type=jnp.float32)
    y = y + b_ref[...].astype(jnp.float32)  # (1, tn) bias broadcasts over rows
    if act == "relu":
        y = jnp.maximum(y, 0.0)
    elif act == "tanh":
        y = jnp.tanh(y)
    o_ref[...] = y.astype(o_ref.dtype)


def _linear_act_ktiled_kernel(x_ref, w_ref, b_ref, o_ref, acc_ref, *, act):
    """K-tiled: accumulate over grid axis 2; bias+activation on last k step."""
    k = pl.program_id(2)

    @pl.when(k == 0)
    def _():
        acc_ref[...] = jnp.zeros_like(acc_ref)

    acc_ref[...] += jnp.dot(
        x_ref[...], w_ref[...], preferred_element_type=jnp.float32
    )

    @pl.when(k == pl.num_programs(2) - 1)
    def _():
        y = acc_ref[...] + b_ref[...].astype(jnp.float32)
        if act == "relu":
            y = jnp.maximum(y, 0.0)
        elif act == "tanh":
            y = jnp.tanh(y)
        o_ref[...] = y.astype(o_ref.dtype)


# --------------------------- hardware queries --------------------------------


@functools.lru_cache(maxsize=1)
def _tpu_vmem_and_cores():
    """(vmem_capacity_bytes, tensorcores_per_chip).

    v7x: 64 MiB VMEM per TC and 2 TCs/chip (megacore-shardable grid axes);
    v5e/v6e: 128 MiB VMEM, 1 TC.  VMEM capacity is used as a generation proxy;
    on failure assume the tightest chip (v7x) so tiling stays conservative.
    """
    try:
        cap = int(pltpu.get_tpu_info().vmem_capacity_bytes)
    except Exception:  # pragma: no cover
        cap = 64 << 20
    cores = 2 if cap <= (64 << 20) else 1
    return cap, cores


def _vmem_budget_bytes():
    """~75% of VMEM: 48 MiB on v7x, 96 MiB on v5e/v6e."""
    cap, _ = _tpu_vmem_and_cores()
    return min(int(cap * 0.75), 96 << 20)


# --------------------------- tile selection ----------------------------------


def _sublane_align(itemsize):
    """Native sublane packing: f32 -> 8 rows, bf16 -> 16, int8/fp8 -> 32."""
    return max(8, 32 // max(int(itemsize), 1))


def _largest_divisor_tile(dim, max_t, align):
    """Largest t <= max_t with dim % t == 0 and t % align == 0 (or t == dim).

    If no aligned divisor fits under the cap, return the SMALLEST aligned
    divisor above it (minimal budget overshoot) instead of silently returning
    the full dim.
    """
    if dim <= max_t:
        return dim
    t = (max_t // align) * align
    while t >= align:
        if dim % t == 0:
            return t
        t -= align
    t = ((max_t // align) + 1) * align
    while t < dim:
        if dim % t == 0:
            return t
        t += align
    return dim


def _choose_tiles(M, K, N, x_itemsize, w_itemsize, out_itemsize):
    """Pick (tm, tk, tn) from the VMEM budget.

    Priorities:
      1. never split M unless VMEM forces it (every extra M tile re-streams
         the whole weight matrix from HBM);
      2. stream the biggest double-bufferable weight tile the budget allows;
      3. keep the parallel grid extent >= #TensorCores so the K-tiled
         (encoder) launch shards across both cores on v7x.
    """
    budget = _vmem_budget_bytes()
    _, num_cores = _tpu_vmem_and_cores()

    # Streamed (double-buffered) weight-tile cap per buffer:
    # ~24 MiB on 128 MiB-VMEM chips (v5e/v6e), ~16 MiB on 64 MiB (v7x).
    wt_cap_bytes = (24 << 20) if budget >= (80 << 20) else (16 << 20)
    wt_cap_elems = wt_cap_bytes // w_itemsize

    # ---- weight tile (tk, tn) ----
    if K * N <= wt_cap_elems:
        tk, tn = K, N                    # whole weight matrix is a single block
    elif K * 512 <= wt_cap_elems:
        # K small (decoder: K=1024): single K block -> no reduction axis, no
        # accumulator; stream wide, lane-dense N tiles.
        tk = K
        tn = _largest_divisor_tile(N, wt_cap_elems // K, 128)
    else:
        # K huge (encoder: K=768000): tile K; reduction axis is 'arbitrary'.
        if N * 128 > wt_cap_elems:
            tn = _largest_divisor_tile(N, 2048, 128)
        elif num_cores > 1 and N >= 2 * 128:
            # v7x: with tn == N (and tm == M) the grid is (1, 1, K//tk) and
            # both 'parallel' axes collapse to 1 -> the second TensorCore
            # idles while one core streams all the weights.  Split N so each
            # core streams half; x is re-read once more (negligible vs. the
            # weight bytes).
            tn = _largest_divisor_tile(N, max(N // num_cores, 128), 128)
        else:
            tn = N
        tk = _largest_divisor_tile(K, max(wt_cap_elems // tn, 128), 128)

    # ---- batch tile tm: full M unless the per-step working set overflows ----
    m_align = _sublane_align(x_itemsize)
    headroom = 4 << 20                   # compiler internal scratch, bias, etc.
    fixed = 2 * tk * tn * w_itemsize + 2 * tn * max(w_itemsize, 4)
    per_row = 2 * tk * x_itemsize + 2 * tn * out_itemsize
    if tk < K:
        per_row += tn * 4                # f32 accumulator scratch
    avail = budget - headroom - fixed
    tm_cap = max(avail // max(per_row, 1), m_align)
    tm = M if M <= tm_cap else _largest_divisor_tile(M, tm_cap, m_align)
    return tm, tk, tn


# ------------------------------ wrapper --------------------------------------


def linear_act(x, w, b, act, *, tiles=None, out_dtype=None, weight_buffers=None):
    """act(x @ w + b) with x:(M,K), w:(K,N) ((in,out)-major), b:(N,).

    out_dtype decouples the stored output dtype from x.dtype (e.g. bf16
    writeback from f32 weights); accumulation is always f32.  weight_buffers=3
    optionally deepens pipelining of the streamed weight tile on the 128 MiB-
    VMEM chips (v5e/v6e) if a trace shows exposed DMA; leave None on v7x.
    """
    M, K = x.shape
    Kw, N = w.shape
    assert K == Kw and b.shape == (N,)
    out_dtype = x.dtype if out_dtype is None else out_dtype

    if tiles is None:
        tm, tk, tn = _choose_tiles(
            M, K, N,
            jnp.dtype(x.dtype).itemsize,
            jnp.dtype(w.dtype).itemsize,
            jnp.dtype(out_dtype).itemsize,
        )
    else:
        tm, tk, tn = tiles
    assert M % tm == 0 and K % tk == 0 and N % tn == 0

    b2 = b.reshape(1, N)                 # 2-D so the bias tiles along lanes
    out_shape = jax.ShapeDtypeStruct((M, N), out_dtype)
    vmem_limit = _vmem_budget_bytes()

    # Advisory: this custom call is a multi-ms HBM hog; don't co-schedule
    # other HBM-heavy ops against it.
    cost = pl.CostEstimate(
        flops=2 * M * K * N,
        transcendentals=(M * N) if act == "tanh" else 0,
        bytes_accessed=(
            M * K * jnp.dtype(x.dtype).itemsize
            + K * N * jnp.dtype(w.dtype).itemsize
            + N * jnp.dtype(b.dtype).itemsize
            + M * N * jnp.dtype(out_dtype).itemsize
        ),
    )

    w_spec_kwargs = {}
    if weight_buffers is not None and weight_buffers != 2:
        w_spec_kwargs["pipeline_mode"] = pl.Buffered(weight_buffers)

    if tk == K:
        # No reduction axis: one grid step per output tile, no accumulator.
        return pl.pallas_call(
            functools.partial(_linear_act_fused_kernel, act=act),
            out_shape=out_shape,
            grid_spec=pltpu.PrefetchScalarGridSpec(
                num_scalar_prefetch=0,
                grid=(M // tm, N // tn),
                in_specs=[
                    pl.BlockSpec((tm, K), lambda i, j: (i, 0)),
                    pl.BlockSpec((K, tn), lambda i, j: (0, j), **w_spec_kwargs),
                    pl.BlockSpec((1, tn), lambda i, j: (0, j)),
                ],
                out_specs=pl.BlockSpec((tm, tn), lambda i, j: (i, j)),
            ),
            compiler_params=pltpu.CompilerParams(
                dimension_semantics=("parallel", "parallel"),
                vmem_limit_bytes=vmem_limit,
            ),
            cost_estimate=cost,
        )(x, w, b2)

    return pl.pallas_call(
        functools.partial(_linear_act_ktiled_kernel, act=act),
        out_shape=out_shape,
        grid_spec=pltpu.PrefetchScalarGridSpec(
            num_scalar_prefetch=0,
            grid=(M // tm, N // tn, K // tk),
            in_specs=[
                pl.BlockSpec((tm, tk), lambda i, j, k: (i, k)),
                pl.BlockSpec((tk, tn), lambda i, j, k: (k, j), **w_spec_kwargs),
                pl.BlockSpec((1, tn), lambda i, j, k: (0, j)),
            ],
            out_specs=pl.BlockSpec((tm, tn), lambda i, j, k: (i, j)),
            scratch_shapes=[pltpu.VMEM((tm, tn), jnp.float32)],
        ),
        compiler_params=pltpu.CompilerParams(
            dimension_semantics=("parallel", "parallel", "arbitrary"),
            vmem_limit_bytes=vmem_limit,
        ),
        cost_estimate=cost,
    )(x, w, b2)


def linear_autoencoder_forward(x, params):
    """Forward pass of LinearAutoencoder: decoder(encoder(x)).

    Weights are stored (in, out)-major in params, so no transpose is needed.
    """
    h = linear_act(x, params["w1"], params["b1"], act="relu")  # encoder
    y = linear_act(h, params["w2"], params["b2"], act="tanh")  # decoder
    return y


def init_params(key, d_in, d_hid, dtype=jnp.float32):
    """PyTorch-like init U(-1/sqrt(fan_in), 1/sqrt(fan_in)); (in,out)-major."""
    k1, k2, k3, k4 = jax.random.split(key, 4)
    s1 = 1.0 / jnp.sqrt(d_in)
    s2 = 1.0 / jnp.sqrt(d_hid)
    return {
        "w1": jax.random.uniform(k1, (d_in, d_hid), jnp.float32, -s1, s1).astype(dtype),
        "b1": jax.random.uniform(k2, (d_hid,), jnp.float32, -s1, s1).astype(dtype),
        "w2": jax.random.uniform(k3, (d_hid, d_in), jnp.float32, -s2, s2).astype(dtype),
        "b2": jax.random.uniform(k4, (d_in,), jnp.float32, -s2, s2).astype(dtype),
    }


if __name__ == "__main__":
    # Scaled-down dims (real module: d_in=768000, d_hid=1024).  Kernels and
    # auto-tiling are dimension-generic.
    B, D_IN, D_HID = 8, 1024, 256

    key = jax.random.PRNGKey(0)
    kx, kp = jax.random.split(key)
    x = jax.random.normal(kx, (B, D_IN), jnp.float32)

    # ---- pure-Python sanity check of the auto-tiler at the REAL dims ----
    # (no 6 GB allocation; just checks divisibility / budget / parallel extent)
    _, n_cores = _tpu_vmem_and_cores()
    for (m, k, n) in [(8, 768000, 1024), (8, 1024, 768000)]:
        tm_, tk_, tn_ = _choose_tiles(m, k, n, 4, 4, 4)
        assert m % tm_ == 0 and k % tk_ == 0 and n % tn_ == 0
        assert tk_ * tn_ * 4 <= (24 << 20)  # streamed weight tile within cap
        if tk_ < k:  # K-tiled (encoder) launch must megacore-shard on v7x
            assert (m // tm_) * (n // tn_) >= n_cores

    # ---- f32 path (small dims hit the fused single-K-block kernel) ----
    params = init_params(kp, D_IN, D_HID, dtype=jnp.float32)
    y = jax.block_until_ready(jax.jit(linear_autoencoder_forward)(x, params))

    h_ref = jnp.maximum(x @ params["w1"] + params["b1"], 0.0)
    y_ref = jnp.tanh(h_ref @ params["w2"] + params["b2"])
    assert y.shape == (B, D_IN)
    assert jnp.allclose(y, y_ref, atol=1e-5, rtol=1e-5)

    # ---- force the K-tiled accumulate path with N split (the v7x encoder
    #      shape of the grid: parallel extent 2 + 'arbitrary' K axis) ----
    h_tiled = linear_act(x, params["w1"], params["b1"], act="relu",
                         tiles=(8, 256, 128))
    assert jnp.allclose(h_tiled, h_ref, atol=1e-5, rtol=1e-5)

    # ---- bf16 weights/activations (halves HBM weight bytes; f32 accum) ----
    params_bf16 = jax.tree_util.tree_map(
        lambda p: p.astype(jnp.bfloat16), params)
    y_bf16 = jax.block_until_ready(
        jax.jit(linear_autoencoder_forward)(x.astype(jnp.bfloat16), params_bf16))
    assert jnp.allclose(y_bf16.astype(jnp.float32), y_ref, atol=5e-2, rtol=5e-2)

    # ---- bf16 output from f32 weights (halved activation writeback) ----
    y_mixed = jax.block_until_ready(
        linear_act(h_ref, params["w2"], params["b2"], act="tanh",
                   out_dtype=jnp.bfloat16))
    assert y_mixed.dtype == jnp.bfloat16
    assert jnp.allclose(y_mixed.astype(jnp.float32), y_ref, atol=5e-2, rtol=5e-2)

    print("KERNEL_OK")
</pallas_src>

<mosaic_0001>
module attributes {stable_mosaic.version = 11 : i64} {
  func.func @_linear_act_fused_kernel(%arg0: i32, %arg1: i32, %arg2: memref<8x256xf32, #tpu.memory_space<vmem>>, %arg3: memref<256x1024xf32, #tpu.memory_space<vmem>>, %arg4: memref<1x1024xf32, #tpu.memory_space<vmem>>, %arg5: memref<8x1024xf32, #tpu.memory_space<vmem>>) attributes {dimension_semantics = [#tpu.dimension_semantics<parallel>, #tpu.dimension_semantics<parallel>], iteration_bounds = array<i64: 1, 1>, scalar_prefetch = 0 : i64, scratch_operands = 0 : i64, tpu.core_type = #tpu.core_type<tc>, window_params = [{transform_indices = @transform_0, window_bounds = array<i64: 8, 256>}, {transform_indices = @transform_1, window_bounds = array<i64: 256, 1024>}, {transform_indices = @transform_2, window_bounds = array<i64: 1, 1024>}, {transform_indices = @transform_3, window_bounds = array<i64: 8, 1024>}]} {
    %c0 = arith.constant 0 : index
    %c0_0 = arith.constant 0 : index
    %0 = vector.load %arg2[%c0, %c0_0] : memref<8x256xf32, #tpu.memory_space<vmem>>, vector<8x256xf32>
    %c0_1 = arith.constant 0 : index
    %c0_2 = arith.constant 0 : index
    %1 = vector.load %arg3[%c0_1, %c0_2] : memref<256x1024xf32, #tpu.memory_space<vmem>>, vector<256x1024xf32>
    %cst = arith.constant dense<0.000000e+00> : vector<8x1024xf32>
    %2 = tpu.matmul %0, %1, %cst {dimension_numbers = #tpu.dot_dimension_numbers<[1], [0], [0], [1], [0, 0, 1, 1], [], []>} : vector<8x256xf32>, vector<256x1024xf32>, vector<8x1024xf32> -> vector<8x1024xf32>
    %c0_3 = arith.constant 0 : index
    %c0_4 = arith.constant 0 : index
    %3 = vector.load %arg4[%c0_3, %c0_4] : memref<1x1024xf32, #tpu.memory_space<vmem>>, vector<1x1024xf32>
    %4 = vector.broadcast %3 : vector<1x1024xf32> to vector<8x1024xf32>
    %5 = arith.addf %2, %4 : vector<8x1024xf32>
    %6 = math.tanh %5 : vector<8x1024xf32>
    %c0_5 = arith.constant 0 : index
    %c0_6 = arith.constant 0 : index
    %7 = vector.load %arg5[%c0_5, %c0_6] : memref<8x1024xf32, #tpu.memory_space<vmem>>, vector<8x1024xf32>
    tpu.vector_store %arg5[%c0_5, %c0_6], %6 {strides = array<i32>} : memref<8x1024xf32, #tpu.memory_space<vmem>>, vector<8x1024xf32>,
    return
  }
  func.func @transform_0(%arg0: i32, %arg1: i32) -> (i32, i32) {
    %c0_i32 = arith.constant 0 : i32
    %c0_i32_0 = arith.constant 0 : i32
    return %arg0, %c0_i32 : i32, i32
  }
  func.func @transform_1(%arg0: i32, %arg1: i32) -> (i32, i32) {
    %c0_i32 = arith.constant 0 : i32
    %c0_i32_0 = arith.constant 0 : i32
    return %c0_i32, %arg1 : i32, i32
  }
  func.func @transform_2(%arg0: i32, %arg1: i32) -> (i32, i32) {
    %c0_i32 = arith.constant 0 : i32
    %c0_i32_0 = arith.constant 0 : i32
    return %c0_i32, %arg1 : i32, i32
  }
  func.func @transform_3(%arg0: i32, %arg1: i32) -> (i32, i32) {
    %c0_i32 = arith.constant 0 : i32
    return %arg0, %arg1 : i32, i32
  }
}

module attributes {stable_mosaic.version = 11 : i64} {
  func.func @_linear_act_fused_kernel(%arg0: i32, %arg1: i32, %arg2: memref<8x1024xf32, #tpu.memory_space<vmem>>, %arg3: memref<1024x256xf32, #tpu.memory_space<vmem>>, %arg4: memref<1x256xf32, #tpu.memory_space<vmem>>, %arg5: memref<8x256xf32, #tpu.memory_space<vmem>>) attributes {dimension_semantics = [#tpu.dimension_semantics<parallel>, #tpu.dimension_semantics<parallel>], iteration_bounds = array<i64: 1, 1>, scalar_prefetch = 0 : i64, scratch_operands = 0 : i64, tpu.core_type = #tpu.core_type<tc>, window_params = [{transform_indices = @transform_0, window_bounds = array<i64: 8, 1024>}, {transform_indices = @transform_1, window_bounds = array<i64: 1024, 256>}, {transform_indices = @transform_2, window_bounds = array<i64: 1, 256>}, {transform_indices = @transform_3, window_bounds = array<i64: 8, 256>}]} {
    %c0 = arith.constant 0 : index
    %c0_0 = arith.constant 0 : index
    %0 = vector.load %arg2[%c0, %c0_0] : memref<8x1024xf32, #tpu.memory_space<vmem>>, vector<8x1024xf32>
    %c0_1 = arith.constant 0 : index
    %c0_2 = arith.constant 0 : index
    %1 = vector.load %arg3[%c0_1, %c0_2] : memref<1024x256xf32, #tpu.memory_space<vmem>>, vector<1024x256xf32>
    %cst = arith.constant dense<0.000000e+00> : vector<8x256xf32>
    %2 = tpu.matmul %0, %1, %cst {dimension_numbers = #tpu.dot_dimension_numbers<[1], [0], [0], [1], [0, 0, 1, 1], [], []>} : vector<8x1024xf32>, vector<1024x256xf32>, vector<8x256xf32> -> vector<8x256xf32>
    %c0_3 = arith.constant 0 : index
    %c0_4 = arith.constant 0 : index
    %3 = vector.load %arg4[%c0_3, %c0_4] : memref<1x256xf32, #tpu.memory_space<vmem>>, vector<1x256xf32>
    %4 = vector.broadcast %3 : vector<1x256xf32> to vector<8x256xf32>
    %5 = arith.addf %2, %4 : vector<8x256xf32>
    %cst_5 = arith.constant 0.000000e+00 : f32
    %6 = vector.broadcast %cst_5 : f32 to vector<8x256xf32>
    %7 = arith.maximumf %5, %6 : vector<8x256xf32>
    %c0_6 = arith.constant 0 : index
    %c0_7 = arith.constant 0 : index
    %8 = vector.load %arg5[%c0_6, %c0_7] : memref<8x256xf32, #tpu.memory_space<vmem>>, vector<8x256xf32>
    tpu.vector_store %arg5[%c0_6, %c0_7], %7 {strides = array<i32>} : memref<8x256xf32, #tpu.memory_space<vmem>>, vector<8x256xf32>,
    return
  }
  func.func @transform_0(%arg0: i32, %arg1: i32) -> (i32, i32) {
    %c0_i32 = arith.constant 0 : i32
    %c0_i32_0 = arith.constant 0 : i32
    return %arg0, %c0_i32 : i32, i32
  }
  func.func @transform_1(%arg0: i32, %arg1: i32) -> (i32, i32) {
    %c0_i32 = arith.constant 0 : i32
    %c0_i32_0 = arith.constant 0 : i32
    return %c0_i32, %arg1 : i32, i32
  }
  func.func @transform_2(%arg0: i32, %arg1: i32) -> (i32, i32) {
    %c0_i32 = arith.constant 0 : i32
    %c0_i32_0 = arith.constant 0 : i32
    return %c0_i32, %arg1 : i32, i32
  }
  func.func @transform_3(%arg0: i32, %arg1: i32) -> (i32, i32) {
    %c0_i32 = arith.constant 0 : i32
    return %arg0, %arg1 : i32, i32
  }
}

</mosaic_0001>

<bundles_post_ra>
// kernel: linear_autoencoder_forward.3
= control target key start
LH: loop header
LB: loop body
LE: loop exit
PB: predicated region body
PF: predicated region fallthrough
CT: control target
= control target key end

     0   :  { %s1748_s0 = inlined_call_operand.vmem [shape: f32[8,256], index: 0, kind: input, shape index: {}]   ;;  %s1749_s1 = inlined_call_operand.vmem [shape: f32[256,1024], index: 1, kind: input, shape index: {}]   ;;  %s1750_s2 = inlined_call_operand.vmem [shape: f32[1,1024], index: 2, kind: input, shape index: {}]   ;;  %s1751_s3 = inlined_call_operand.hbm [shape: f32[8,1024], index: 3, kind: output, shape index: {}]  }
   0x1   :  { %v18_v0 = vld [vmem:[%s1749_s1 + $0x8] sm:$0xff]  ;;  %v20_v2 = vld [vmem:[%s1749_s1 + $0x18] sm:$0xff]  ;;  %v17_v5 = vld [vmem:[%s1749_s1] sm:$0xff] }
   0x2   :  { %v26_v1 = vld [vmem:[%s1749_s1 + $0x48] sm:$0xff]  ;;  %v28_v4 = vld [vmem:[%s1749_s1 + $0x58] sm:$0xff]  ;;  %v25_v6 = vld [vmem:[%s1749_s1 + $0x40] sm:$0xff] }
   0x3   :  { %v629_v3 = vpack.c.bf16 %v26_v1, %v18_v0  ;;  %v693_v7 = vpack.c.bf16 %v28_v4, %v20_v2  ;;  %v631_v8 = vpack.c.bf16 %v25_v6, %v17_v5  ;;  %v19_v9 = vld [vmem:[%s1749_s1 + $0x10] sm:$0xff]  ;;  %v34_v11 = vld [vmem:[%s1749_s1 + $0x88] sm:$0xff]  ;;  %v36_v14 = vld [vmem:[%s1749_s1 + $0x98] sm:$0xff] }
   0x4   :  { %v27_v10 = vld [vmem:[%s1749_s1 + $0x50] sm:$0xff]  ;;  %v42_v13 = vld [vmem:[%s1749_s1 + $0xc8] sm:$0xff]  ;;  %v44_v15 = vld [vmem:[%s1749_s1 + $0xd8] sm:$0xff] }
   0x5   :  { %630 = vmatprep.subr.bf16.mxu0 %v629_v3  ;;  %v695_v12 = vpack.c.bf16 %v27_v10, %v19_v9  ;;  %694 = vmatprep.subr.bf16.mxu1 %v693_v7  ;;  %v633_v16 = vpack.c.bf16 %v42_v13, %v34_v11  ;;  %v697_v17 = vpack.c.bf16 %v44_v15, %v36_v14  ;;  %v33_v18 = vld [vmem:[%s1749_s1 + $0x80] sm:$0xff]  ;;  %v35_v20 = vld [vmem:[%s1749_s1 + $0x90] sm:$0xff]  ;;  %v50_v23 = vld [vmem:[%s1749_s1 + $0x108] sm:$0xff] }
   0x6   :  { %632 = vmatpush1.bf16.msra.mxu0 %v631_v8  ;;  %v41_v19 = vld [vmem:[%s1749_s1 + $0xc0] sm:$0xff]  ;;  %v43_v22 = vld [vmem:[%s1749_s1 + $0xd0] sm:$0xff]  ;;  %v58_v24 = vld [vmem:[%s1749_s1 + $0x148] sm:$0xff] }
   0x7   :  { %696 = vmatpush1.bf16.msra.mxu1 %v695_v12  ;;  %v635_v21 = vpack.c.bf16 %v41_v19, %v33_v18  ;;  %634 = vmatprep.subr.bf16.mxu0 %v633_v16  ;;  %v699_v25 = vpack.c.bf16 %v43_v22, %v35_v20  ;;  %v637_v26 = vpack.c.bf16 %v58_v24, %v50_v23  ;;  %v52_v27 = vld [vmem:[%s1749_s1 + $0x118] sm:$0xff]  ;;  %v49_v29 = vld [vmem:[%s1749_s1 + $0x100] sm:$0xff]  ;;  %v51_v32 = vld [vmem:[%s1749_s1 + $0x110] sm:$0xff] }
   0x8   :  { %698 = vmatprep.subr.bf16.mxu1 %v697_v17  ;;  %v60_v28 = vld [vmem:[%s1749_s1 + $0x158] sm:$0xff]  ;;  %v57_v31 = vld [vmem:[%s1749_s1 + $0x140] sm:$0xff]  ;;  %v59_v33 = vld [vmem:[%s1749_s1 + $0x150] sm:$0xff] }
   0x9   :  { %v701_v30 = vpack.c.bf16 %v60_v28, %v52_v27  ;;  %v639_v34 = vpack.c.bf16 %v57_v31, %v49_v29  ;;  %v66_v35 = vld [vmem:[%s1749_s1 + $0x188] sm:$0xff]  ;;  %v68_v37 = vld [vmem:[%s1749_s1 + $0x198] sm:$0xff]  ;;  %v703_v38 = vpack.c.bf16 %v59_v33, %v51_v32  ;;  %v65_v41 = vld [vmem:[%s1749_s1 + $0x180] sm:$0xff] }
   0xa   :  { %636 = vmatpush1.bf16.msra.mxu0 %v635_v21  ;;  %v74_v36 = vld [vmem:[%s1749_s1 + $0x1c8] sm:$0xff]  ;;  %v76_v40 = vld [vmem:[%s1749_s1 + $0x1d8] sm:$0xff]  ;;  %v73_v42 = vld [vmem:[%s1749_s1 + $0x1c0] sm:$0xff] }
   0xb   :  { %700 = vmatpush1.bf16.msra.mxu1 %v699_v25  ;;  %638 = vmatprep.subr.bf16.mxu0 %v637_v26  ;;  %v641_v39 = vpack.c.bf16 %v74_v36, %v66_v35  ;;  %v705_v43 = vpack.c.bf16 %v76_v40, %v68_v37  ;;  %v67_v44 = vld [vmem:[%s1749_s1 + $0x190] sm:$0xff]  ;;  %v82_v46 = vld [vmem:[%s1749_s1 + $0x208] sm:$0xff]  ;;  %v84_v48 = vld [vmem:[%s1749_s1 + $0x218] sm:$0xff]  ;;  %v643_v50 = vpack.c.bf16 %v73_v42, %v65_v41 }
   0xc   :  { %702 = vmatprep.subr.bf16.mxu1 %v701_v30  ;;  %v75_v45 = vld [vmem:[%s1749_s1 + $0x1d0] sm:$0xff]  ;;  %v90_v47 = vld [vmem:[%s1749_s1 + $0x248] sm:$0xff]  ;;  %v92_v49 = vld [vmem:[%s1749_s1 + $0x258] sm:$0xff] }
   0xd   :  { %v707_v51 = vpack.c.bf16 %v75_v45, %v67_v44  ;;  %v645_v52 = vpack.c.bf16 %v90_v47, %v82_v46  ;;  %v81_v53 = vld [vmem:[%s1749_s1 + $0x200] sm:$0xff]  ;;  %v83_v55 = vld [vmem:[%s1749_s1 + $0x210] sm:$0xff]  ;;  %v709_v56 = vpack.c.bf16 %v92_v49, %v84_v48  ;;  %v98_v58 = vld [vmem:[%s1749_s1 + $0x288] sm:$0xff] }
   0xe   :  { %640 = vmatpush1.bf16.msra.mxu0 %v639_v34  ;;  %v89_v54 = vld [vmem:[%s1749_s1 + $0x240] sm:$0xff]  ;;  %v91_v57 = vld [vmem:[%s1749_s1 + $0x250] sm:$0xff]  ;;  %v106_v59 = vld [vmem:[%s1749_s1 + $0x2c8] sm:$0xff] }
   0xf   :  { %704 = vmatpush1.bf16.msra.mxu1 %v703_v38  ;;  %642 = vmatprep.subr.bf16.mxu0 %v641_v39  ;;  %v100_v60 = vld [vmem:[%s1749_s1 + $0x298] sm:$0xff]  ;;  %v647_v62 = vpack.c.bf16 %v89_v54, %v81_v53  ;;  %v711_v63 = vpack.c.bf16 %v91_v57, %v83_v55  ;;  %v649_v0 = vpack.c.bf16 %v106_v59, %v98_v58  ;;  %v97_v1 = vld [vmem:[%s1749_s1 + $0x280] sm:$0xff]  ;;  %v99_v3 = vld [vmem:[%s1749_s1 + $0x290] sm:$0xff] }
  0x10   :  { %706 = vmatprep.subr.bf16.mxu1 %v705_v43  ;;  %v108_v61 = vld [vmem:[%s1749_s1 + $0x2d8] sm:$0xff]  ;;  %v105_v2 = vld [vmem:[%s1749_s1 + $0x2c0] sm:$0xff]  ;;  %v107_v5 = vld [vmem:[%s1749_s1 + $0x2d0] sm:$0xff] }
  0x11   :  { %v713_v4 = vpack.c.bf16 %v108_v61, %v100_v60  ;;  %v114_v6 = vld [vmem:[%s1749_s1 + $0x308] sm:$0xff]  ;;  %v116_v8 = vld [vmem:[%s1749_s1 + $0x318] sm:$0xff]  ;;  %v651_v10 = vpack.c.bf16 %v105_v2, %v97_v1  ;;  %v715_v11 = vpack.c.bf16 %v107_v5, %v99_v3  ;;  %v113_v13 = vld [vmem:[%s1749_s1 + $0x300] sm:$0xff] }
  0x12   :  { %644 = vmatpush1.bf16.msra.mxu0 %v643_v50  ;;  %v122_v7 = vld [vmem:[%s1749_s1 + $0x348] sm:$0xff]  ;;  %v124_v9 = vld [vmem:[%s1749_s1 + $0x358] sm:$0xff]  ;;  %v121_v14 = vld [vmem:[%s1749_s1 + $0x340] sm:$0xff] }
  0x13   :  { %708 = vmatpush1.bf16.msra.mxu1 %v707_v51  ;;  %646 = vmatprep.subr.bf16.mxu0 %v645_v52  ;;  %v653_v12 = vpack.c.bf16 %v122_v7, %v114_v6  ;;  %v115_v15 = vld [vmem:[%s1749_s1 + $0x310] sm:$0xff]  ;;  %v717_v16 = vpack.c.bf16 %v124_v9, %v116_v8  ;;  %v130_v18 = vld [vmem:[%s1749_s1 + $0x388] sm:$0xff]  ;;  %v132_v20 = vld [vmem:[%s1749_s1 + $0x398] sm:$0xff]  ;;  %v655_v22 = vpack.c.bf16 %v121_v14, %v113_v13 }
  0x14   :  { %710 = vmatprep.subr.bf16.mxu1 %v709_v56  ;;  %v123_v17 = vld [vmem:[%s1749_s1 + $0x350] sm:$0xff]  ;;  %v138_v19 = vld [vmem:[%s1749_s1 + $0x3c8] sm:$0xff]  ;;  %v140_v21 = vld [vmem:[%s1749_s1 + $0x3d8] sm:$0xff] }
  0x15   :  { %v719_v23 = vpack.c.bf16 %v123_v17, %v115_v15  ;;  %v657_v24 = vpack.c.bf16 %v138_v19, %v130_v18  ;;  %v129_v25 = vld [vmem:[%s1749_s1 + $0x380] sm:$0xff]  ;;  %v131_v27 = vld [vmem:[%s1749_s1 + $0x390] sm:$0xff]  ;;  %v721_v28 = vpack.c.bf16 %v140_v21, %v132_v20  ;;  %v146_v30 = vld [vmem:[%s1749_s1 + $0x408] sm:$0xff] }
  0x16   :  { %648 = vmatpush1.bf16.msra.mxu0 %v647_v62  ;;  %v137_v26 = vld [vmem:[%s1749_s1 + $0x3c0] sm:$0xff]  ;;  %v139_v29 = vld [vmem:[%s1749_s1 + $0x3d0] sm:$0xff]  ;;  %v154_v31 = vld [vmem:[%s1749_s1 + $0x448] sm:$0xff] }
  0x17   :  { %712 = vmatpush1.bf16.msra.mxu1 %v711_v63  ;;  %650 = vmatprep.subr.bf16.mxu0 %v649_v0  ;;  %v148_v32 = vld [vmem:[%s1749_s1 + $0x418] sm:$0xff]  ;;  %v659_v34 = vpack.c.bf16 %v137_v26, %v129_v25  ;;  %v723_v35 = vpack.c.bf16 %v139_v29, %v131_v27  ;;  %v661_v36 = vpack.c.bf16 %v154_v31, %v146_v30  ;;  %v145_v37 = vld [vmem:[%s1749_s1 + $0x400] sm:$0xff]  ;;  %v147_v39 = vld [vmem:[%s1749_s1 + $0x410] sm:$0xff] }
  0x18   :  { %714 = vmatprep.subr.bf16.mxu1 %v713_v4  ;;  %v156_v33 = vld [vmem:[%s1749_s1 + $0x458] sm:$0xff]  ;;  %v153_v38 = vld [vmem:[%s1749_s1 + $0x440] sm:$0xff]  ;;  %v155_v41 = vld [vmem:[%s1749_s1 + $0x450] sm:$0xff] }
  0x19   :  { %v725_v40 = vpack.c.bf16 %v156_v33, %v148_v32  ;;  %v162_v42 = vld [vmem:[%s1749_s1 + $0x488] sm:$0xff]  ;;  %v164_v44 = vld [vmem:[%s1749_s1 + $0x498] sm:$0xff]  ;;  %v663_v46 = vpack.c.bf16 %v153_v38, %v145_v37  ;;  %v727_v47 = vpack.c.bf16 %v155_v41, %v147_v39  ;;  %v161_v49 = vld [vmem:[%s1749_s1 + $0x480] sm:$0xff] }
  0x1a   :  { %652 = vmatpush1.bf16.msra.mxu0 %v651_v10  ;;  %v170_v43 = vld [vmem:[%s1749_s1 + $0x4c8] sm:$0xff]  ;;  %v172_v45 = vld [vmem:[%s1749_s1 + $0x4d8] sm:$0xff]  ;;  %v169_v50 = vld [vmem:[%s1749_s1 + $0x4c0] sm:$0xff] }
  0x1b   :  { %716 = vmatpush1.bf16.msra.mxu1 %v715_v11  ;;  %654 = vmatprep.subr.bf16.mxu0 %v653_v12  ;;  %v665_v48 = vpack.c.bf16 %v170_v43, %v162_v42  ;;  %v163_v51 = vld [vmem:[%s1749_s1 + $0x490] sm:$0xff]  ;;  %v729_v52 = vpack.c.bf16 %v172_v45, %v164_v44  ;;  %v178_v54 = vld [vmem:[%s1749_s1 + $0x508] sm:$0xff]  ;;  %v180_v56 = vld [vmem:[%s1749_s1 + $0x518] sm:$0xff]  ;;  %v667_v58 = vpack.c.bf16 %v169_v50, %v161_v49 }
  0x1c   :  { %718 = vmatprep.subr.bf16.mxu1 %v717_v16  ;;  %v171_v53 = vld [vmem:[%s1749_s1 + $0x4d0] sm:$0xff]  ;;  %v186_v55 = vld [vmem:[%s1749_s1 + $0x548] sm:$0xff]  ;;  %v188_v57 = vld [vmem:[%s1749_s1 + $0x558] sm:$0xff] }
  0x1d   :  { %v731_v59 = vpack.c.bf16 %v171_v53, %v163_v51  ;;  %v669_v60 = vpack.c.bf16 %v186_v55, %v178_v54  ;;  %v177_v61 = vld [vmem:[%s1749_s1 + $0x500] sm:$0xff]  ;;  %v179_v63 = vld [vmem:[%s1749_s1 + $0x510] sm:$0xff]  ;;  %v733_v0 = vpack.c.bf16 %v188_v57, %v180_v56  ;;  %v194_v2 = vld [vmem:[%s1749_s1 + $0x588] sm:$0xff] }
  0x1e   :  { %656 = vmatpush1.bf16.msra.mxu0 %v655_v22  ;;  %v185_v62 = vld [vmem:[%s1749_s1 + $0x540] sm:$0xff]  ;;  %v187_v1 = vld [vmem:[%s1749_s1 + $0x550] sm:$0xff]  ;;  %v202_v3 = vld [vmem:[%s1749_s1 + $0x5c8] sm:$0xff] }
  0x1f   :  { %720 = vmatpush1.bf16.msra.mxu1 %v719_v23  ;;  %658 = vmatprep.subr.bf16.mxu0 %v657_v24  ;;  %v196_v4 = vld [vmem:[%s1749_s1 + $0x598] sm:$0xff]  ;;  %v671_v6 = vpack.c.bf16 %v185_v62, %v177_v61  ;;  %v193_v7 = vld [vmem:[%s1749_s1 + $0x580] sm:$0xff]  ;;  %v735_v8 = vpack.c.bf16 %v187_v1, %v179_v63  ;;  %v673_v9 = vpack.c.bf16 %v202_v3, %v194_v2  ;;  %v195_v11 = vld [vmem:[%s1749_s1 + $0x590] sm:$0xff] }
  0x20   :  { %722 = vmatprep.subr.bf16.mxu1 %v721_v28  ;;  %v204_v5 = vld [vmem:[%s1749_s1 + $0x5d8] sm:$0xff]  ;;  %v201_v10 = vld [vmem:[%s1749_s1 + $0x5c0] sm:$0xff]  ;;  %v203_v12 = vld [vmem:[%s1749_s1 + $0x5d0] sm:$0xff] }
  0x21   :  { %v737_v13 = vpack.c.bf16 %v204_v5, %v196_v4  ;;  %v210_v14 = vld [vmem:[%s1749_s1 + $0x608] sm:$0xff]  ;;  %v212_v17 = vld [vmem:[%s1749_s1 + $0x618] sm:$0xff]  ;;  %v675_v19 = vpack.c.bf16 %v201_v10, %v193_v7  ;;  %v739_v20 = vpack.c.bf16 %v203_v12, %v195_v11  ;;  %v209_v22 = vld [vmem:[%s1749_s1 + $0x600] sm:$0xff] }
  0x22   :  { %660 = vmatpush1.bf16.msra.mxu0 %v659_v34  ;;  %v218_v15 = vld [vmem:[%s1749_s1 + $0x648] sm:$0xff]  ;;  %v220_v18 = vld [vmem:[%s1749_s1 + $0x658] sm:$0xff]  ;;  %v217_v23 = vld [vmem:[%s1749_s1 + $0x640] sm:$0xff] }
  0x23   :  { %724 = vmatpush1.bf16.msra.mxu1 %v723_v35  ;;  %662 = vmatprep.subr.bf16.mxu0 %v661_v36  ;;  %v1244_v16 = vld [vmem:[%s1748_s0 + $0x8] sm:$0xff]  ;;  %v677_v21 = vpack.c.bf16 %v218_v15, %v210_v14  ;;  %v211_v24 = vld [vmem:[%s1749_s1 + $0x610] sm:$0xff]  ;;  %v741_v25 = vpack.c.bf16 %v220_v18, %v212_v17  ;;  %v228_v29 = vld [vmem:[%s1749_s1 + $0x698] sm:$0xff]  ;;  %v679_v31 = vpack.c.bf16 %v217_v23, %v209_v22 }
  0x24   :  { %726 = vmatprep.subr.bf16.mxu1 %v725_v40  ;;  %379 = vmatprep.mubr.f32.mxu0 %v1244_v16  ;;  %v219_v26 = vld [vmem:[%s1749_s1 + $0x650] sm:$0xff]  ;;  %v226_v27 = vld [vmem:[%s1749_s1 + $0x688] sm:$0xff]  ;;  %v236_v30 = vld [vmem:[%s1749_s1 + $0x6d8] sm:$0xff] }
  0x25   :  { %450 = vmatprep.mubr.f32.mxu1 %v1244_v16  ;;  %v234_v28 = vld [vmem:[%s1749_s1 + $0x6c8] sm:$0xff]  ;;  %v743_v32 = vpack.c.bf16 %v219_v26, %v211_v24  ;;  %v225_v34 = vld [vmem:[%s1749_s1 + $0x680] sm:$0xff]  ;;  %v227_v36 = vld [vmem:[%s1749_s1 + $0x690] sm:$0xff]  ;;  %v745_v37 = vpack.c.bf16 %v236_v30, %v228_v29 }
  0x26   :  { %664 = vmatpush1.bf16.msra.mxu0 %v663_v46  ;;  %v681_v33 = vpack.c.bf16 %v234_v28, %v226_v27  ;;  %v233_v35 = vld [vmem:[%s1749_s1 + $0x6c0] sm:$0xff]  ;;  %v235_v38 = vld [vmem:[%s1749_s1 + $0x6d0] sm:$0xff]  ;;  %v242_v39 = vld [vmem:[%s1749_s1 + $0x708] sm:$0xff] }
  0x27   :  { %728 = vmatpush1.bf16.msra.mxu1 %v727_v47  ;;  %666 = vmatprep.subr.bf16.mxu0 %v665_v48  ;;  %v250_v40 = vld [vmem:[%s1749_s1 + $0x748] sm:$0xff]  ;;  %v244_v41 = vld [vmem:[%s1749_s1 + $0x718] sm:$0xff]  ;;  %v683_v43 = vpack.c.bf16 %v233_v35, %v225_v34  ;;  %v747_v44 = vpack.c.bf16 %v235_v38, %v227_v36  ;;  %v241_v46 = vld [vmem:[%s1749_s1 + $0x700] sm:$0xff] }
  0x28   :  { %730 = vmatprep.subr.bf16.mxu1 %v729_v52  ;;  %v252_v42 = vld [vmem:[%s1749_s1 + $0x758] sm:$0xff]  ;;  %v685_v45 = vpack.c.bf16 %v250_v40, %v242_v39  ;;  %v249_v47 = vld [vmem:[%s1749_s1 + $0x740] sm:$0xff]  ;;  %v243_v48 = vld [vmem:[%s1749_s1 + $0x710] sm:$0xff] }
  0x29   :  { %v749_v49 = vpack.c.bf16 %v252_v42, %v244_v41  ;;  %v251_v50 = vld [vmem:[%s1749_s1 + $0x750] sm:$0xff]  ;;  %v258_v51 = vld [vmem:[%s1749_s1 + $0x788] sm:$0xff]  ;;  %v260_v53 = vld [vmem:[%s1749_s1 + $0x798] sm:$0xff]  ;;  %v687_v55 = vpack.c.bf16 %v249_v47, %v241_v46 }
  0x2a   :  { %668 = vmatpush1.bf16.msra.mxu0 %v667_v58  ;;  %v266_v52 = vld [vmem:[%s1749_s1 + $0x7c8] sm:$0xff]  ;;  %v268_v54 = vld [vmem:[%s1749_s1 + $0x7d8] sm:$0xff]  ;;  %v751_v56 = vpack.c.bf16 %v251_v50, %v243_v48  ;;  %v257_v58 = vld [vmem:[%s1749_s1 + $0x780] sm:$0xff] }
  0x2b   :  { %732 = vmatpush1.bf16.msra.mxu1 %v731_v59  ;;  %670 = vmatprep.subr.bf16.mxu0 %v669_v60  ;;  %v689_v57 = vpack.c.bf16 %v266_v52, %v258_v51  ;;  %v265_v59 = vld [vmem:[%s1749_s1 + $0x7c0] sm:$0xff]  ;;  %v259_v60 = vld [vmem:[%s1749_s1 + $0x790] sm:$0xff]  ;;  %v753_v61 = vpack.c.bf16 %v268_v54, %v260_v53  ;;  %v22_v63 = vld [vmem:[%s1749_s1 + $0x28] sm:$0xff] }
  0x2c   :  { %734 = vmatprep.subr.bf16.mxu1 %v733_v0  ;;  %v267_v62 = vld [vmem:[%s1749_s1 + $0x7d0] sm:$0xff]  ;;  %v30_v0 = vld [vmem:[%s1749_s1 + $0x68] sm:$0xff]  ;;  %v24_v1 = vld [vmem:[%s1749_s1 + $0x38] sm:$0xff]  ;;  %v691_v3 = vpack.c.bf16 %v265_v59, %v257_v58 }
  0x2d   :  { %v32_v2 = vld [vmem:[%s1749_s1 + $0x78] sm:$0xff]  ;;  %v755_v4 = vpack.c.bf16 %v267_v62, %v259_v60  ;;  %v757_v5 = vpack.c.bf16 %v30_v0, %v22_v63  ;;  %v29_v7 = vld [vmem:[%s1749_s1 + $0x60] sm:$0xff]  ;;  %v31_v10 = vld [vmem:[%s1749_s1 + $0x70] sm:$0xff] }
  0x2e   :  { %672 = vmatpush1.bf16.msra.mxu0 %v671_v6  ;;  %v21_v6 = vld [vmem:[%s1749_s1 + $0x20] sm:$0xff]  ;;  %v38_v11 = vld [vmem:[%s1749_s1 + $0xa8] sm:$0xff]  ;;  %v48_v14 = vld [vmem:[%s1749_s1 + $0xf8] sm:$0xff] }
  0x2f   :  { %736 = vmatpush1.bf16.msra.mxu1 %v735_v8  ;;  %674 = vmatprep.subr.bf16.mxu0 %v673_v9  ;;  %v23_v8 = vld [vmem:[%s1749_s1 + $0x30] sm:$0xff]  ;;  %v821_v9 = vpack.c.bf16 %v32_v2, %v24_v1  ;;  %v46_v12 = vld [vmem:[%s1749_s1 + $0xe8] sm:$0xff]  ;;  %v1377_v15 = vld [vmem:[%s1748_s0] sm:$0xff]  ;;  %v759_v17 = vpack.c.bf16 %v29_v7, %v21_v6 }
  0x30   :  { %738 = vmatprep.subr.bf16.mxu1 %v737_v13  ;;  %v40_v13 = vld [vmem:[%s1749_s1 + $0xb8] sm:$0xff]  ;;  %v823_v18 = vpack.c.bf16 %v31_v10, %v23_v8  ;;  %v39_v22 = vld [vmem:[%s1749_s1 + $0xb0] sm:$0xff]  ;;  %v62_v26 = vld [vmem:[%s1749_s1 + $0x168] sm:$0xff] }
  0x31   :  { %v825_v23 = vpack.c.bf16 %v48_v14, %v40_v13  ;;  %v47_v24 = vld [vmem:[%s1749_s1 + $0xf0] sm:$0xff]  ;;  %v56_v27 = vld [vmem:[%s1749_s1 + $0x138] sm:$0xff]  ;;  %v78_v38 = vld [vmem:[%s1749_s1 + $0x1e8] sm:$0xff] }
  0x32   :  { %676 = vmatpush1.bf16.msra.mxu0 %v675_v19  ;;  %v761_v19 = vpack.c.bf16 %v46_v12, %v38_v11  ;;  %v64_v28 = vld [vmem:[%s1749_s1 + $0x178] sm:$0xff]  ;;  %v827_v30 = vpack.c.bf16 %v47_v24, %v39_v22  ;;  %v55_v34 = vld [vmem:[%s1749_s1 + $0x130] sm:$0xff]  ;;  %v86_v48 = vld [vmem:[%s1749_s1 + $0x228] sm:$0xff] }
  0x33   :  { %740 = vmatpush1.bf16.msra.mxu1 %v739_v20  ;;  %678 = vmatprep.subr.bf16.mxu0 %v677_v21  ;;  %v37_v20 = vld [vmem:[%s1749_s1 + $0xa0] sm:$0xff]  ;;  %v829_v35 = vpack.c.bf16 %v64_v28, %v56_v27  ;;  %v63_v36 = vld [vmem:[%s1749_s1 + $0x170] sm:$0xff]  ;;  %v72_v39 = vld [vmem:[%s1749_s1 + $0x1b8] sm:$0xff] }
  0x34   :  { %742 = vmatprep.subr.bf16.mxu1 %v741_v25  ;;  %v45_v21 = vld [vmem:[%s1749_s1 + $0xe0] sm:$0xff]  ;;  %v54_v25 = vld [vmem:[%s1749_s1 + $0x128] sm:$0xff]  ;;  %v80_v40 = vld [vmem:[%s1749_s1 + $0x1f8] sm:$0xff]  ;;  %v831_v42 = vpack.c.bf16 %v63_v36, %v55_v34 }
  0x35   :  { %v763_v29 = vpack.c.bf16 %v45_v21, %v37_v20  ;;  %v71_v46 = vld [vmem:[%s1749_s1 + $0x1b0] sm:$0xff]  ;;  %v88_v50 = vld [vmem:[%s1749_s1 + $0x238] sm:$0xff]  ;;  %v102_v60 = vld [vmem:[%s1749_s1 + $0x2a8] sm:$0xff] }
  0x36   :  { %680 = vmatpush1.bf16.msra.mxu0 %v679_v31  ;;  %v765_v31 = vpack.c.bf16 %v62_v26, %v54_v25  ;;  %v79_v47 = vld [vmem:[%s1749_s1 + $0x1f0] sm:$0xff]  ;;  %v96_v51 = vld [vmem:[%s1749_s1 + $0x278] sm:$0xff]  ;;  %v118_v8 = vld [vmem:[%s1749_s1 + $0x328] sm:$0xff] }
  0x37   :  { %744 = vmatpush1.bf16.msra.mxu1 %v743_v32  ;;  %682 = vmatprep.subr.bf16.mxu0 %v681_v33  ;;  %v53_v32 = vld [vmem:[%s1749_s1 + $0x120] sm:$0xff]  ;;  %v835_v53 = vpack.c.bf16 %v79_v47, %v71_v46  ;;  %v837_v58 = vpack.c.bf16 %v96_v51, %v88_v50  ;;  %v95_v59 = vld [vmem:[%s1749_s1 + $0x270] sm:$0xff]  ;;  %v104_v62 = vld [vmem:[%s1749_s1 + $0x2b8] sm:$0xff] }
  0x38   :  { %746 = vmatprep.subr.bf16.mxu1 %v745_v37  ;;  %v61_v33 = vld [vmem:[%s1749_s1 + $0x160] sm:$0xff]  ;;  %v70_v37 = vld [vmem:[%s1749_s1 + $0x1a8] sm:$0xff]  ;;  %v112_v63 = vld [vmem:[%s1749_s1 + $0x2f8] sm:$0xff] }
  0x39   :  { %v767_v41 = vpack.c.bf16 %v61_v33, %v53_v32  ;;  %v841_v6 = vpack.c.bf16 %v112_v63, %v104_v62  ;;  %v111_v7 = vld [vmem:[%s1749_s1 + $0x2f0] sm:$0xff]  ;;  %v120_v10 = vld [vmem:[%s1749_s1 + $0x338] sm:$0xff]  ;;  %v117_v13 = vld [vmem:[%s1749_s1 + $0x320] sm:$0xff] }
  0x3a   :  { %684 = vmatpush1.bf16.msra.mxu0 %v683_v43  ;;  %v769_v43 = vpack.c.bf16 %v78_v38, %v70_v37  ;;  %v128_v11 = vld [vmem:[%s1749_s1 + $0x378] sm:$0xff]  ;;  %v127_v20 = vld [vmem:[%s1749_s1 + $0x370] sm:$0xff]  ;;  %v134_v22 = vld [vmem:[%s1749_s1 + $0x3a8] sm:$0xff] }
  0x3b   :  { %748 = vmatpush1.bf16.msra.mxu1 %v747_v44  ;;  %686 = vmatprep.subr.bf16.mxu0 %v685_v45  ;;  %v69_v44 = vld [vmem:[%s1749_s1 + $0x1a0] sm:$0xff]  ;;  %v845_v21 = vpack.c.bf16 %v128_v11, %v120_v10 }
  0x3c   :  { %750 = vmatprep.subr.bf16.mxu1 %v749_v49  ;;  %v77_v45 = vld [vmem:[%s1749_s1 + $0x1e0] sm:$0xff]  ;;  %v94_v49 = vld [vmem:[%s1749_s1 + $0x268] sm:$0xff] }
  0x3d   :  { %v771_v52 = vpack.c.bf16 %v77_v45, %v69_v44  ;;  %v773_v54 = vpack.c.bf16 %v94_v49, %v86_v48 }
  0x3e   :  { %688 = vmatpush1.bf16.msra.mxu0 %v687_v55  ;;  %v85_v55 = vld [vmem:[%s1749_s1 + $0x220] sm:$0xff] }
  0x3f   :  { %752 = vmatpush1.bf16.msra.mxu1 %v751_v56  ;;  %690 = vmatprep.subr.bf16.mxu0 %v689_v57  ;;  %v93_v56 = vld [vmem:[%s1749_s1 + $0x260] sm:$0xff]  ;;  %v87_v57 = vld [vmem:[%s1749_s1 + $0x230] sm:$0xff] }
  0x40   :  { %754 = vmatprep.subr.bf16.mxu1 %v753_v61  ;;  %v110_v61 = vld [vmem:[%s1749_s1 + $0x2e8] sm:$0xff]  ;;  %v775_v0 = vpack.c.bf16 %v93_v56, %v85_v55  ;;  %v839_v1 = vpack.c.bf16 %v95_v59, %v87_v57 }
  0x41   :  { %v777_v2 = vpack.c.bf16 %v110_v61, %v102_v60 }
  0x42   :  { %692 = vmatpush1.bf16.msra.mxu0 %v691_v3  ;;  %v101_v3 = vld [vmem:[%s1749_s1 + $0x2a0] sm:$0xff] }
  0x43   :  { %756 = vmatpush1.bf16.msra.mxu1 %v755_v4  ;;  %758 = vmatprep.subr.bf16.mxu0 %v757_v5  ;;  %v109_v4 = vld [vmem:[%s1749_s1 + $0x2e0] sm:$0xff]  ;;  %v103_v5 = vld [vmem:[%s1749_s1 + $0x2b0] sm:$0xff] }
  0x44   :  { %822 = vmatprep.subr.bf16.mxu1 %v821_v9  ;;  %v126_v9 = vld [vmem:[%s1749_s1 + $0x368] sm:$0xff]  ;;  %v779_v12 = vpack.c.bf16 %v109_v4, %v101_v3  ;;  %v843_v14 = vpack.c.bf16 %v111_v7, %v103_v5 }
  0x45   :  { %380 = vmatmul.mubr.f32.vlgmr.msra.gmra.mrb[0].mxu0 %v1377_v15 }
  0x46   :  { %451 = vmatmul.mubr.f32.vlgmr.msra.gmra.mrb[0].mxu1 %v1377_v15  ;;  %760 = vmatpush1.bf16.msra.mxu0 %v759_v17  ;;  %v781_v17 = vpack.c.bf16 %v126_v9, %v118_v8 }
  0x47   :  { %824 = vmatpush1.bf16.msra.mxu1 %v823_v18  ;;  %762 = vmatprep.subr.bf16.mxu0 %v761_v19  ;;  %v125_v18 = vld [vmem:[%s1749_s1 + $0x360] sm:$0xff]  ;;  %v119_v19 = vld [vmem:[%s1749_s1 + $0x330] sm:$0xff] }
  0x48   :  { %826 = vmatprep.subr.bf16.mxu1 %v825_v23  ;;  %521 = vmatprep.mubr.f32.mxu0 %v1244_v16  ;;  %v142_v23 = vld [vmem:[%s1749_s1 + $0x3e8] sm:$0xff] }
  0x49   :  { %592 = vmatprep.mubr.f32.mxu1 %v1244_v16  ;;  %v833_v16 = vpack.c.bf16 %v80_v40, %v72_v39 }
  0x4a   :  { %764 = vmatpush1.bf16.msra.mxu0 %v763_v29 }
  0x4b   :  { %828 = vmatpush1.bf16.msra.mxu1 %v827_v30  ;;  %766 = vmatprep.subr.bf16.mxu0 %v765_v31 }
  0x4c   :  { %830 = vmatprep.subr.bf16.mxu1 %v829_v35 }
  0x4e   :  { %768 = vmatpush1.bf16.msra.mxu0 %v767_v41 }
  0x4f   :  { %832 = vmatpush1.bf16.msra.mxu1 %v831_v42  ;;  %770 = vmatprep.subr.bf16.mxu0 %v769_v43 }
  0x50   :  { %834 = vmatprep.subr.bf16.mxu1 %v833_v16 }
  0x52   :  { %772 = vmatpush1.bf16.msra.mxu0 %v771_v52 }
  0x53   :  { %836 = vmatpush1.bf16.msra.mxu1 %v835_v53  ;;  %774 = vmatprep.subr.bf16.mxu0 %v773_v54 }
  0x54   :  { %838 = vmatprep.subr.bf16.mxu1 %v837_v58 }
  0x56   :  { %776 = vmatpush1.bf16.msra.mxu0 %v775_v0 }
  0x57   :  { %840 = vmatpush1.bf16.msra.mxu1 %v839_v1  ;;  %778 = vmatprep.subr.bf16.mxu0 %v777_v2 }
  0x58   :  { %842 = vmatprep.subr.bf16.mxu1 %v841_v6 }
  0x59   :  { %8 = vsyncpa [#allocation3], 0  ;;  %v136_v24 = vld [vmem:[%s1749_s1 + $0x3b8] sm:$0xff]  ;;  %v783_v26 = vpack.c.bf16 %v125_v18, %v117_v13  ;;  %v847_v27 = vpack.c.bf16 %v127_v20, %v119_v19  ;;  %v785_v28 = vpack.c.bf16 %v142_v23, %v134_v22  ;;  %v133_v29 = vld [vmem:[%s1749_s1 + $0x3a0] sm:$0xff] }
  0x5a   :  { %v144_v25 = vld [vmem:[%s1749_s1 + $0x3f8] sm:$0xff]  ;;  %780 = vmatpush1.bf16.msra.mxu0 %v779_v12  ;;  %v141_v30 = vld [vmem:[%s1749_s1 + $0x3e0] sm:$0xff]  ;;  %v135_v31 = vld [vmem:[%s1749_s1 + $0x3b0] sm:$0xff] }
  0x5b   :  { %844 = vmatpush1.bf16.msra.mxu1 %v843_v14  ;;  %782 = vmatprep.subr.bf16.mxu0 %v781_v17  ;;  %v849_v32 = vpack.c.bf16 %v144_v25, %v136_v24  ;;  %v143_v33 = vld [vmem:[%s1749_s1 + $0x3f0] sm:$0xff]  ;;  %v150_v34 = vld [vmem:[%s1749_s1 + $0x428] sm:$0xff]  ;;  %v152_v36 = vld [vmem:[%s1749_s1 + $0x438] sm:$0xff]  ;;  %v787_v38 = vpack.c.bf16 %v141_v30, %v133_v29 }
  0x5c   :  { %846 = vmatprep.subr.bf16.mxu1 %v845_v21  ;;  %v158_v35 = vld [vmem:[%s1749_s1 + $0x468] sm:$0xff]  ;;  %v160_v37 = vld [vmem:[%s1749_s1 + $0x478] sm:$0xff]  ;;  %v851_v39 = vpack.c.bf16 %v143_v33, %v135_v31  ;;  %v149_v41 = vld [vmem:[%s1749_s1 + $0x420] sm:$0xff] }
  0x5d   :  { %v789_v40 = vpack.c.bf16 %v158_v35, %v150_v34  ;;  %v157_v42 = vld [vmem:[%s1749_s1 + $0x460] sm:$0xff]  ;;  %v151_v43 = vld [vmem:[%s1749_s1 + $0x430] sm:$0xff]  ;;  %v853_v44 = vpack.c.bf16 %v160_v37, %v152_v36  ;;  %v166_v46 = vld [vmem:[%s1749_s1 + $0x4a8] sm:$0xff] }
  0x5e   :  { %784 = vmatpush1.bf16.msra.mxu0 %v783_v26  ;;  %v159_v45 = vld [vmem:[%s1749_s1 + $0x470] sm:$0xff]  ;;  %v174_v16 = vld [vmem:[%s1749_s1 + $0x4e8] sm:$0xff]  ;;  %v168_v47 = vld [vmem:[%s1749_s1 + $0x4b8] sm:$0xff]  ;;  %v791_v49 = vpack.c.bf16 %v157_v42, %v149_v41 }
  0x5f   :  { %848 = vmatpush1.bf16.msra.mxu1 %v847_v27  ;;  %786 = vmatprep.subr.bf16.mxu0 %v785_v28  ;;  %v176_v48 = vld [vmem:[%s1749_s1 + $0x4f8] sm:$0xff]  ;;  %v855_v50 = vpack.c.bf16 %v159_v45, %v151_v43  ;;  %v793_v51 = vpack.c.bf16 %v174_v16, %v166_v46  ;;  %v165_v52 = vld [vmem:[%s1749_s1 + $0x4a0] sm:$0xff]  ;;  %v167_v54 = vld [vmem:[%s1749_s1 + $0x4b0] sm:$0xff] }
  0x60   :  { %850 = vmatprep.subr.bf16.mxu1 %v849_v32  ;;  %v173_v53 = vld [vmem:[%s1749_s1 + $0x4e0] sm:$0xff]  ;;  %v857_v55 = vpack.c.bf16 %v176_v48, %v168_v47  ;;  %v175_v56 = vld [vmem:[%s1749_s1 + $0x4f0] sm:$0xff]  ;;  %v182_v57 = vld [vmem:[%s1749_s1 + $0x528] sm:$0xff] }
  0x61   :  { %v190_v58 = vld [vmem:[%s1749_s1 + $0x568] sm:$0xff]  ;;  %v184_v59 = vld [vmem:[%s1749_s1 + $0x538] sm:$0xff]  ;;  %v795_v61 = vpack.c.bf16 %v173_v53, %v165_v52  ;;  %v859_v62 = vpack.c.bf16 %v175_v56, %v167_v54  ;;  %v181_v0 = vld [vmem:[%s1749_s1 + $0x520] sm:$0xff] }
  0x62   :  { %788 = vmatpush1.bf16.msra.mxu0 %v787_v38  ;;  %v192_v60 = vld [vmem:[%s1749_s1 + $0x578] sm:$0xff]  ;;  %v797_v63 = vpack.c.bf16 %v190_v58, %v182_v57  ;;  %v189_v1 = vld [vmem:[%s1749_s1 + $0x560] sm:$0xff]  ;;  %v183_v2 = vld [vmem:[%s1749_s1 + $0x530] sm:$0xff] }
  0x63   :  { %852 = vmatpush1.bf16.msra.mxu1 %v851_v39  ;;  %790 = vmatprep.subr.bf16.mxu0 %v789_v40  ;;  %v861_v3 = vpack.c.bf16 %v192_v60, %v184_v59  ;;  %v191_v4 = vld [vmem:[%s1749_s1 + $0x570] sm:$0xff]  ;;  %v198_v5 = vld [vmem:[%s1749_s1 + $0x5a8] sm:$0xff]  ;;  %v200_v7 = vld [vmem:[%s1749_s1 + $0x5b8] sm:$0xff]  ;;  %v799_v9 = vpack.c.bf16 %v189_v1, %v181_v0 }
  0x64   :  { %854 = vmatprep.subr.bf16.mxu1 %v853_v44  ;;  %v206_v6 = vld [vmem:[%s1749_s1 + $0x5e8] sm:$0xff]  ;;  %v208_v8 = vld [vmem:[%s1749_s1 + $0x5f8] sm:$0xff]  ;;  %v863_v10 = vpack.c.bf16 %v191_v4, %v183_v2  ;;  %v197_v12 = vld [vmem:[%s1749_s1 + $0x5a0] sm:$0xff]  ;;  %v275_v4 = vlaneseq }
  0x65   :  { %v801_v11 = vpack.c.bf16 %v206_v6, %v198_v5  ;;  %v205_v13 = vld [vmem:[%s1749_s1 + $0x5e0] sm:$0xff]  ;;  %v199_v14 = vld [vmem:[%s1749_s1 + $0x5b0] sm:$0xff]  ;;  %v865_v17 = vpack.c.bf16 %v208_v8, %v200_v7  ;;  %v214_v19 = vld [vmem:[%s1749_s1 + $0x628] sm:$0xff] }
  0x66   :  { %792 = vmatpush1.bf16.msra.mxu0 %v791_v49  ;;  %v207_v18 = vld [vmem:[%s1749_s1 + $0x5f0] sm:$0xff]  ;;  %v222_v20 = vld [vmem:[%s1749_s1 + $0x668] sm:$0xff]  ;;  %v216_v21 = vld [vmem:[%s1749_s1 + $0x638] sm:$0xff]  ;;  %v803_v23 = vpack.c.bf16 %v205_v13, %v197_v12  ;;  %v276_v5 = vshrl.u32 %v275_v4, 7 }
  0x67   :  { %856 = vmatpush1.bf16.msra.mxu1 %v855_v50  ;;  %794 = vmatprep.subr.bf16.mxu0 %v793_v51  ;;  %v224_v22 = vld [vmem:[%s1749_s1 + $0x678] sm:$0xff]  ;;  %v867_v24 = vpack.c.bf16 %v207_v18, %v199_v14  ;;  %v805_v25 = vpack.c.bf16 %v222_v20, %v214_v19  ;;  %v213_v26 = vld [vmem:[%s1749_s1 + $0x620] sm:$0xff]  ;;  %v215_v28 = vld [vmem:[%s1749_s1 + $0x630] sm:$0xff] }
  0x68   :  { %858 = vmatprep.subr.bf16.mxu1 %v857_v55  ;;  %v221_v27 = vld [vmem:[%s1749_s1 + $0x660] sm:$0xff]  ;;  %v869_v29 = vpack.c.bf16 %v224_v22, %v216_v21  ;;  %v223_v30 = vld [vmem:[%s1749_s1 + $0x670] sm:$0xff]  ;;  %v230_v31 = vld [vmem:[%s1749_s1 + $0x6a8] sm:$0xff]  ;;  %v277_v6 = vsub.s32 0, %v276_v5  ;;  %v285_v8 = vsub.s32 2, %v276_v5 }
  0x69   :  { %v238_v32 = vld [vmem:[%s1749_s1 + $0x6e8] sm:$0xff]  ;;  %v232_v33 = vld [vmem:[%s1749_s1 + $0x6b8] sm:$0xff]  ;;  %v807_v35 = vpack.c.bf16 %v221_v27, %v213_v26  ;;  %v871_v36 = vpack.c.bf16 %v223_v30, %v215_v28  ;;  %v229_v38 = vld [vmem:[%s1749_s1 + $0x6a0] sm:$0xff]  ;;  %v293_v28 = vsub.s32 4, %v276_v5  ;;  %v297_v30 = vsub.s32 5, %v276_v5 }
  0x6a   :  { %796 = vmatpush1.bf16.msra.mxu0 %v795_v61  ;;  %v240_v34 = vld [vmem:[%s1749_s1 + $0x6f8] sm:$0xff]  ;;  %v809_v37 = vpack.c.bf16 %v238_v32, %v230_v31  ;;  %v237_v39 = vld [vmem:[%s1749_s1 + $0x6e0] sm:$0xff]  ;;  %v231_v40 = vld [vmem:[%s1749_s1 + $0x6b0] sm:$0xff]  ;;  %v305_v31 = vsub.s32 7, %v276_v5 }
  0x6b   :  { %860 = vmatpush1.bf16.msra.mxu1 %v859_v62  ;;  %798 = vmatprep.subr.bf16.mxu0 %v797_v63  ;;  %v873_v41 = vpack.c.bf16 %v240_v34, %v232_v33  ;;  %v239_v42 = vld [vmem:[%s1749_s1 + $0x6f0] sm:$0xff]  ;;  %v246_v43 = vld [vmem:[%s1749_s1 + $0x728] sm:$0xff]  ;;  %v248_v45 = vld [vmem:[%s1749_s1 + $0x738] sm:$0xff]  ;;  %v811_v16 = vpack.c.bf16 %v237_v39, %v229_v38 }
  0x6c   :  { %862 = vmatprep.subr.bf16.mxu1 %v861_v3  ;;  %v254_v44 = vld [vmem:[%s1749_s1 + $0x768] sm:$0xff]  ;;  %v256_v46 = vld [vmem:[%s1749_s1 + $0x778] sm:$0xff]  ;;  %v875_v47 = vpack.c.bf16 %v239_v42, %v231_v40  ;;  %v245_v49 = vld [vmem:[%s1749_s1 + $0x720] sm:$0xff] }
  0x6d   :  { %v813_v48 = vpack.c.bf16 %v254_v44, %v246_v43  ;;  %v253_v50 = vld [vmem:[%s1749_s1 + $0x760] sm:$0xff]  ;;  %v247_v51 = vld [vmem:[%s1749_s1 + $0x730] sm:$0xff]  ;;  %v877_v52 = vpack.c.bf16 %v256_v46, %v248_v45  ;;  %v262_v54 = vld [vmem:[%s1749_s1 + $0x7a8] sm:$0xff] }
  0x6e   :  { %800 = vmatpush1.bf16.msra.mxu0 %v799_v9  ;;  %v255_v53 = vld [vmem:[%s1749_s1 + $0x770] sm:$0xff]  ;;  %v270_v55 = vld [vmem:[%s1749_s1 + $0x7e8] sm:$0xff]  ;;  %v264_v56 = vld [vmem:[%s1749_s1 + $0x7b8] sm:$0xff]  ;;  %v815_v58 = vpack.c.bf16 %v253_v50, %v245_v49  ;;  %v281_v9 = vsub.s32 1, %v276_v5 }
  0x6f   :  { %864 = vmatpush1.bf16.msra.mxu1 %v863_v10  ;;  %802 = vmatprep.subr.bf16.mxu0 %v801_v11  ;;  %v272_v57 = vld [vmem:[%s1749_s1 + $0x7f8] sm:$0xff]  ;;  %v879_v59 = vpack.c.bf16 %v255_v53, %v247_v51  ;;  %v817_v60 = vpack.c.bf16 %v270_v55, %v262_v54  ;;  %v261_v61 = vld [vmem:[%s1749_s1 + $0x7a0] sm:$0xff]  ;;  %v263_v0 = vld [vmem:[%s1749_s1 + $0x7b0] sm:$0xff]  ;;  %v289_v10 = vsub.s32 3, %v276_v5 }
  0x70   :  { %866 = vmatprep.subr.bf16.mxu1 %v865_v17  ;;  %v269_v62 = vld [vmem:[%s1749_s1 + $0x7e0] sm:$0xff]  ;;  %v881_v63 = vpack.c.bf16 %v272_v57, %v264_v56  ;;  %v271_v1 = vld [vmem:[%s1749_s1 + $0x7f0] sm:$0xff]  ;;  %s926_s1 = smov [#allocation2]  }
  0x71   :  { %v819_v2 = vpack.c.bf16 %v269_v62, %v261_v61  ;;  %v883_v3 = vpack.c.bf16 %v271_v1, %v263_v0  ;;  %v273_v7 = vld [vmem:[%s1750_s2] sm:$0xff]  ;;  %s621_s2 = sshll.u32 %s926_s1, 4  ;;  %s622_s2 = int_to_ptr.vmem [resolvable:$true] %s621_s2 }
  0x72   :  { %804 = vmatpush1.bf16.msra.mxu0 %v803_v23  ;;  %v278_v11 = vrot.slane %v273_v7, %v277_v6  ;;  %v286_v12 = vrot.slane %v273_v7, %v285_v8  ;;  %v282_v13 = vrot.slane %v273_v7, %v281_v9  ;;  %v290_v14 = vrot.slane %v273_v7, %v289_v10  ;;  %s902_s8 = scalar_lea.vmem %s622_s2, 1024  ;;  %p907_p1 = scmp.lt.s32.totalorder %s622_s2, %s622_s2 }
  0x73   :  { %868 = vmatpush1.bf16.msra.mxu1 %v867_v24  ;;  %806 = vmatprep.subr.bf16.mxu0 %v805_v25  ;;  %v294_v32 = vrot.slane %v273_v7, %v293_v28  ;;  %v298_v34 = vrot.slane %v273_v7, %v297_v30  ;;  %p903_p0 = scmp.ne.s32.totalorder %s622_s2, %s902_s8  ;;  %p908_p2 = scmp.lt.s32.totalorder %s902_s8, %s902_s8 }
  0x74   :  { %870 = vmatprep.subr.bf16.mxu1 %v869_v29  ;;  %v301_v29 = vsub.s32 6, %v276_v5 }
  0x75   :  { %p909_p3 = por %p908_p2, %p907_p1 }
  0x76   :  { %808 = vmatpush1.bf16.msra.mxu0 %v807_v35  ;;  %v302_v33 = vrot.slane %v273_v7, %v301_v29  ;;  %v306_v35 = vrot.slane %v273_v7, %v305_v31 }
  0x77   :  { %872 = vmatpush1.bf16.msra.mxu1 %v871_v36  ;;  %810 = vmatprep.subr.bf16.mxu0 %v809_v37  ;;  %p910_p4 = pnand %p909_p3, %p903_p0 }
  0x78   :  { %874 = vmatprep.subr.bf16.mxu1 %v873_v41 }
  0x7a   :  { %812 = vmatpush1.bf16.msra.mxu0 %v811_v16 }
  0x7b   :  { %876 = vmatpush1.bf16.msra.mxu1 %v875_v47  ;;  %814 = vmatprep.subr.bf16.mxu0 %v813_v48 }
  0x7c   :  { %878 = vmatprep.subr.bf16.mxu1 %v877_v52 }
  0x7e   :  { %816 = vmatpush1.bf16.msra.mxu0 %v815_v58 }
  0x7f   :  { %880 = vmatpush1.bf16.msra.mxu1 %v879_v59  ;;  %818 = vmatprep.subr.bf16.mxu0 %v817_v60 }
  0x80   :  { %882 = vmatprep.subr.bf16.mxu1 %v881_v63 }
  0x82   :  { %820 = vmatpush1.bf16.msra.mxu0 %v819_v2 }
  0x83   :  { %884 = vmatpush1.bf16.msra.mxu1 %v883_v3 }
  0x85   :  { %522 = vmatmul.mubr.f32.vlgmr.msra.gmra.mrb[2].mxu0 %v1377_v15 }
  0x86   :  { %593 = vmatmul.mubr.f32.vlgmr.msra.gmra.mrb[2].mxu1 %v1377_v15 }
 0x118   :  { %v381_v17 = vpop.f32.mrb[0].mxu0 }
 0x119   :  { %v382_v18 = vadd.f32 %v381_v17, %v278_v11  ;;  %v452_v19 = vpop.f32.mrb[0].mxu1  ;;  %v383_v20 = vpop.f32.mrb[1].mxu0 }
 0x11a   :  { %v453_v21 = vadd.f32 %v452_v19, %v286_v12  ;;  %v384_v15 = vadd.f32 %v383_v20, %v282_v13  ;;  %v454_v22 = vpop.f32.mrb[1].mxu1 }
 0x11b   :  { %886 = vtanh.f32 %v382_v18  ;;  %v455_v23 = vadd.f32 %v454_v22, %v290_v14 }
 0x11c   :  { %888 = vtanh.f32 %v453_v21 }
 0x11d   :  { %890 = vtanh.f32 %v384_v15 }
 0x11e   :  { %892 = vtanh.f32 %v455_v23 }
 0x125   :  { %v887_v24 = vpop.eup %886 }
 0x126   :  { %v889_v25 = vpop.eup %888  ;;  %607 = vst [vmem:[#allocation2] sm:$0xff] %v887_v24 }
 0x127   :  { %v891_v26 = vpop.eup %890  ;;  %609 = vst [vmem:[#allocation2 + $0x10] sm:$0xff] %v889_v25 }
 0x128   :  { %v893_v27 = vpop.eup %892  ;;  %608 = vst [vmem:[#allocation2 + $0x8] sm:$0xff] %v891_v26 }
 0x129   :  { %610 = vst [vmem:[#allocation2 + $0x18] sm:$0xff] %v893_v27 }
 0x158   :  { %v523_v36 = vpop.f32.mrb[2].mxu0 }
 0x159   :  { %v524_v37 = vadd.f32 %v523_v36, %v294_v32  ;;  %v594_v38 = vpop.f32.mrb[2].mxu1  ;;  %v525_v39 = vpop.f32.mrb[3].mxu0 }
 0x15a   :  { %v595_v40 = vadd.f32 %v594_v38, %v302_v33  ;;  %v526_v41 = vadd.f32 %v525_v39, %v298_v34  ;;  %v596_v42 = vpop.f32.mrb[3].mxu1 }
 0x15b   :  { %894 = vtanh.f32 %v524_v37  ;;  %v597_v43 = vadd.f32 %v596_v42, %v306_v35 }
 0x15c   :  { %896 = vtanh.f32 %v595_v40 }
 0x15d   :  { %898 = vtanh.f32 %v526_v41 }
 0x15e   :  { %900 = vtanh.f32 %v597_v43 }
 0x165   :  { %v895_v44 = vpop.eup %894 }
 0x166   :  { %v897_v45 = vpop.eup %896  ;;  %611 = vst [vmem:[#allocation2 + $0x20] sm:$0xff] %v895_v44 }
 0x167   :  { %v899_v46 = vpop.eup %898  ;;  %613 = vst [vmem:[#allocation2 + $0x30] sm:$0xff] %v897_v45 }
 0x168   :  { %v901_v16 = vpop.eup %900  ;;  %612 = vst [vmem:[#allocation2 + $0x28] sm:$0xff] %v899_v46 }
 0x169   :  { %614 = vst [vmem:[#allocation2 + $0x38] sm:$0xff] %v901_v16 }
 0x16a   :  { %913 = shalt.err (!%p910_p4)
}
 0x16b   :  { %s914_s11 = scalar_lea.hbm %s1751_s3, 1024 }
 0x16c   :  { %p915_p5 = scmp.ne.s32.totalorder %s1751_s3, %s914_s11  ;;  %p918_p6 = scmp.lt.u32.totalorder %s914_s11, %s1751_s3 }
 0x16e   :  { %p920_p7 = pnand %p918_p6, %p915_p5 }
 0x170   :  { %923 = shalt.err (!%p920_p7)
}
 0x171   :  { %624 = dma.vmem_to_hbm [thread:$0]  %s622_s2, 1024, %s1751_s3, [#allocation3]  }
 0x172   :  { %924 = dma.done.wait [#allocation3], 1024  }
 0x173   :  { %925 = vsyncadd [#allocation3], 4294966272 }
 0x174   :  { %628 = vsyncpa [#allocation3], 1 }

// kernel: linear_autoencoder_forward.2
= control target key start
LH: loop header
LB: loop body
LE: loop exit
PB: predicated region body
PF: predicated region fallthrough
CT: control target
= control target key end

     0   :  { %8 = vsyncpa [#allocation3], 0  ;;  %s1027_s0 = inlined_call_operand.hbm [shape: f32[8,1024], index: 0, kind: input, shape index: {}]   ;;  %s1028_s1 = inlined_call_operand.hbm [shape: f32[1024,256], index: 1, kind: input, shape index: {}]   ;;  %s1029_s2 = inlined_call_operand.hbm [shape: f32[1,256], index: 2, kind: input, shape index: {}]   ;;  %s1030_s3 = inlined_call_operand.vmem [shape: f32[8,256], index: 3, kind: output, shape index: {}]  }
   0x1   :  { %9 = vsyncpa [#allocation5], 0  ;;  %s960_s12 = smov [#allocation4]   ;;  %s890_s16 = scalar_lea.hbm %s1028_s1, 32768 }
   0x2   :  { %s25_s13 = sshll.u32 %s960_s12, 4  ;;  %p891_p0 = scmp.ne.s32.totalorder %s1028_s1, %s890_s16  ;;  %s26_s13 = int_to_ptr.vmem [resolvable:$true] %s25_s13 }
   0x3   :  { %p894_p1 = scmp.lt.u32.totalorder %s890_s16, %s1028_s1 }
   0x5   :  { %p896_p2 = pnand %p894_p1, %p891_p0 }
   0x7   :  { %899 = shalt.err (!%p896_p2)
}
   0x8   :  { %s900_s21 = scalar_lea.vmem %s26_s13, 32768  ;;  %p905_p4 = scmp.lt.s32.totalorder %s26_s13, %s26_s13 }
   0x9   :  { %p901_p3 = scmp.ne.s32.totalorder %s26_s13, %s900_s21  ;;  %p906_p5 = scmp.lt.s32.totalorder %s900_s21, %s900_s21 }
   0xb   :  { %p907_p6 = por %p906_p5, %p905_p4 }
   0xd   :  { %p908_p7 = pnand %p907_p6, %p901_p3 }
   0xf   :  { %911 = shalt.err (!%p908_p7)
}
  0x10   :  { %s961_s22 = smov 256   ;;  %s962_s23 = smov 16  }
  0x11   :  { %31 = dma.hbm_to_vmem [thread:$0]  %s1028_s1, 32768, %s26_s13, [#allocation5], %s961_s22, %s961_s22, %s962_s23  }
  0x12   :  { %s963_s26 = smov [#allocation2]   ;;  %s964_s28 = smov [#allocation6]  }
  0x13   :  { %s16_s27 = sshll.u32 %s963_s26, 4  ;;  %s38_s29 = sshll.u32 %s964_s28, 4  ;;  %s17_s27 = int_to_ptr.vmem [resolvable:$true] %s16_s27  ;;  %s39_s29 = int_to_ptr.vmem [resolvable:$true] %s38_s29 }
  0x14   :  { %s912_s5 = scalar_lea.hbm %s1027_s0, 1024 }
  0x15   :  { %p913_p8 = scmp.ne.s32.totalorder %s1027_s0, %s912_s5  ;;  %p916_p9 = scmp.lt.u32.totalorder %s912_s5, %s1027_s0 }
  0x17   :  { %p918_p10 = pnand %p916_p9, %p913_p8 }
  0x19   :  { %921 = shalt.err (!%p918_p10)
}
  0x1a   :  { %s922_s1 = scalar_lea.vmem %s17_s27, 1024  ;;  %p927_p12 = scmp.lt.s32.totalorder %s17_s27, %s17_s27 }
  0x1b   :  { %p923_p11 = scmp.ne.s32.totalorder %s17_s27, %s922_s1  ;;  %p928_p13 = scmp.lt.s32.totalorder %s922_s1, %s922_s1 }
  0x1d   :  { %p929_p0 = por %p928_p13, %p927_p12 }
  0x1f   :  { %p930_p1 = pnand %p929_p0, %p923_p11 }
  0x21   :  { %933 = shalt.err (!%p930_p1)
}
  0x22   :  { %19 = dma.hbm_to_vmem [thread:$0]  %s1027_s0, 1024, %s17_s27, [#allocation3]  }
  0x23   :  { %s934_s14 = scalar_lea.hbm %s1029_s2, 32 }
  0x24   :  { %p935_p2 = scmp.ne.s32.totalorder %s1029_s2, %s934_s14  ;;  %p938_p3 = scmp.lt.u32.totalorder %s934_s14, %s1029_s2 }
  0x26   :  { %p940_p4 = pnand %p938_p3, %p935_p2 }
  0x28   :  { %943 = shalt.err (!%p940_p4)
}
  0x29   :  { %s944_s19 = scalar_lea.vmem %s39_s29, 32  ;;  %p949_p6 = scmp.lt.s32.totalorder %s39_s29, %s39_s29 }
  0x2a   :  { %p945_p5 = scmp.ne.s32.totalorder %s39_s29, %s944_s19  ;;  %p950_p7 = scmp.lt.s32.totalorder %s944_s19, %s944_s19 }
  0x2c   :  { %p951_p8 = por %p950_p7, %p949_p6 }
  0x2e   :  { %p952_p9 = pnand %p951_p8, %p945_p5 }
  0x30   :  { %955 = shalt.err (!%p952_p9)
}
  0x31   :  { %41 = dma.hbm_to_vmem [thread:$0]  %s1029_s2, 32, %s39_s29, [#allocation5]  }
  0x32   :  { %956 = dma.done.wait [#allocation3], 1024  }
  0x33   :  { %957 = vsyncadd [#allocation3], 4294966272 }
  0x34   :  { %958 = dma.done.wait [#allocation5], 32800  }
  0x35   :  { %959 = vsyncadd [#allocation5], 4294934496  ;;  %v60_v0 = vld [vmem:[#allocation4 + $0x8] sm:$0xff]  ;;  %v62_v1 = vld [vmem:[#allocation4 + $0x18] sm:$0xff] }
  0x36   :  { %v188_v2 = vld [vmem:[#allocation4 + $0x408] sm:$0xff]  ;;  %v621_v3 = vpack.c.bf16 %v62_v1, %v60_v0  ;;  %v190_v4 = vld [vmem:[#allocation4 + $0x418] sm:$0xff]  ;;  %v59_v5 = vld [vmem:[#allocation4] sm:$0xff] }
  0x37   :  { %v61_v6 = vld [vmem:[#allocation4 + $0x10] sm:$0xff]  ;;  %v749_v7 = vpack.c.bf16 %v190_v4, %v188_v2  ;;  %v187_v9 = vld [vmem:[#allocation4 + $0x400] sm:$0xff]  ;;  %v64_v11 = vld [vmem:[#allocation4 + $0x28] sm:$0xff] }
  0x38   :  { %v623_v8 = vpack.c.bf16 %v61_v6, %v59_v5  ;;  %v189_v10 = vld [vmem:[#allocation4 + $0x410] sm:$0xff]  ;;  %622 = vmatprep.subr.bf16.mxu1 %v621_v3  ;;  %v66_v13 = vld [vmem:[#allocation4 + $0x38] sm:$0xff]  ;;  %v192_v14 = vld [vmem:[#allocation4 + $0x428] sm:$0xff] }
  0x39   :  { %v751_v12 = vpack.c.bf16 %v189_v10, %v187_v9  ;;  %v194_v15 = vld [vmem:[#allocation4 + $0x438] sm:$0xff]  ;;  %750 = vmatprep.subr.bf16.mxu0 %v749_v7  ;;  %v625_v16 = vpack.c.bf16 %v66_v13, %v64_v11  ;;  %v63_v18 = vld [vmem:[#allocation4 + $0x20] sm:$0xff]  ;;  %v65_v19 = vld [vmem:[#allocation4 + $0x30] sm:$0xff] }
  0x3a   :  { %624 = vmatpush1.bf16.msra.mxu1 %v623_v8  ;;  %v753_v17 = vpack.c.bf16 %v194_v15, %v192_v14  ;;  %v191_v20 = vld [vmem:[#allocation4 + $0x420] sm:$0xff]  ;;  %v627_v21 = vpack.c.bf16 %v65_v19, %v63_v18  ;;  %v193_v22 = vld [vmem:[#allocation4 + $0x430] sm:$0xff]  ;;  %v68_v23 = vld [vmem:[#allocation4 + $0x48] sm:$0xff] }
  0x3b   :  { %752 = vmatpush1.bf16.msra.mxu0 %v751_v12  ;;  %v70_v24 = vld [vmem:[#allocation4 + $0x58] sm:$0xff]  ;;  %626 = vmatprep.subr.bf16.mxu1 %v625_v16  ;;  %v755_v25 = vpack.c.bf16 %v193_v22, %v191_v20  ;;  %v196_v27 = vld [vmem:[#allocation4 + $0x448] sm:$0xff]  ;;  %v67_v29 = vld [vmem:[#allocation4 + $0x40] sm:$0xff] }
  0x3c   :  { %754 = vmatprep.subr.bf16.mxu0 %v753_v17  ;;  %v629_v26 = vpack.c.bf16 %v70_v24, %v68_v23  ;;  %v198_v28 = vld [vmem:[#allocation4 + $0x458] sm:$0xff]  ;;  %v69_v31 = vld [vmem:[#allocation4 + $0x50] sm:$0xff]  ;;  %v195_v32 = vld [vmem:[#allocation4 + $0x440] sm:$0xff] }
  0x3d   :  { %v757_v30 = vpack.c.bf16 %v198_v28, %v196_v27  ;;  %v197_v33 = vld [vmem:[#allocation4 + $0x450] sm:$0xff]  ;;  %v631_v34 = vpack.c.bf16 %v69_v31, %v67_v29  ;;  %v72_v35 = vld [vmem:[#allocation4 + $0x68] sm:$0xff]  ;;  %v74_v36 = vld [vmem:[#allocation4 + $0x78] sm:$0xff] }
  0x3e   :  { %628 = vmatpush1.bf16.msra.mxu1 %v627_v21  ;;  %v200_v37 = vld [vmem:[#allocation4 + $0x468] sm:$0xff]  ;;  %v759_v38 = vpack.c.bf16 %v197_v33, %v195_v32  ;;  %v633_v39 = vpack.c.bf16 %v74_v36, %v72_v35  ;;  %v202_v40 = vld [vmem:[#allocation4 + $0x478] sm:$0xff]  ;;  %v71_v41 = vld [vmem:[#allocation4 + $0x60] sm:$0xff] }
  0x3f   :  { %756 = vmatpush1.bf16.msra.mxu0 %v755_v25  ;;  %630 = vmatprep.subr.bf16.mxu1 %v629_v26  ;;  %v73_v42 = vld [vmem:[#allocation4 + $0x70] sm:$0xff]  ;;  %v761_v43 = vpack.c.bf16 %v202_v40, %v200_v37  ;;  %v199_v44 = vld [vmem:[#allocation4 + $0x460] sm:$0xff]  ;;  %v76_v46 = vld [vmem:[#allocation4 + $0x88] sm:$0xff] }
  0x40   :  { %758 = vmatprep.subr.bf16.mxu0 %v757_v30  ;;  %v201_v45 = vld [vmem:[#allocation4 + $0x470] sm:$0xff]  ;;  %v78_v47 = vld [vmem:[#allocation4 + $0x98] sm:$0xff]  ;;  %v204_v48 = vld [vmem:[#allocation4 + $0x488] sm:$0xff]  ;;  %v635_v50 = vpack.c.bf16 %v73_v42, %v71_v41 }
  0x41   :  { %v206_v49 = vld [vmem:[#allocation4 + $0x498] sm:$0xff]  ;;  %v763_v51 = vpack.c.bf16 %v201_v45, %v199_v44  ;;  %v637_v52 = vpack.c.bf16 %v78_v47, %v76_v46  ;;  %v75_v53 = vld [vmem:[#allocation4 + $0x80] sm:$0xff]  ;;  %v77_v54 = vld [vmem:[#allocation4 + $0x90] sm:$0xff] }
  0x42   :  { %632 = vmatpush1.bf16.msra.mxu1 %v631_v34  ;;  %v203_v55 = vld [vmem:[#allocation4 + $0x480] sm:$0xff]  ;;  %v765_v56 = vpack.c.bf16 %v206_v49, %v204_v48  ;;  %v205_v57 = vld [vmem:[#allocation4 + $0x490] sm:$0xff]  ;;  %v80_v58 = vld [vmem:[#allocation4 + $0xa8] sm:$0xff]  ;;  %v639_v62 = vpack.c.bf16 %v77_v54, %v75_v53 }
  0x43   :  { %760 = vmatpush1.bf16.msra.mxu0 %v759_v38  ;;  %634 = vmatprep.subr.bf16.mxu1 %v633_v39  ;;  %v82_v59 = vld [vmem:[#allocation4 + $0xb8] sm:$0xff]  ;;  %v208_v60 = vld [vmem:[#allocation4 + $0x4a8] sm:$0xff]  ;;  %v767_v63 = vpack.c.bf16 %v205_v57, %v203_v55  ;;  %v79_v1 = vld [vmem:[#allocation4 + $0xa0] sm:$0xff] }
  0x44   :  { %762 = vmatprep.subr.bf16.mxu0 %v761_v43  ;;  %v210_v61 = vld [vmem:[#allocation4 + $0x4b8] sm:$0xff]  ;;  %v641_v0 = vpack.c.bf16 %v82_v59, %v80_v58  ;;  %v81_v2 = vld [vmem:[#allocation4 + $0xb0] sm:$0xff]  ;;  %v207_v3 = vld [vmem:[#allocation4 + $0x4a0] sm:$0xff] }
  0x45   :  { %v769_v4 = vpack.c.bf16 %v210_v61, %v208_v60  ;;  %v209_v5 = vld [vmem:[#allocation4 + $0x4b0] sm:$0xff]  ;;  %v84_v6 = vld [vmem:[#allocation4 + $0xc8] sm:$0xff]  ;;  %v86_v7 = vld [vmem:[#allocation4 + $0xd8] sm:$0xff]  ;;  %v643_v10 = vpack.c.bf16 %v81_v2, %v79_v1 }
  0x46   :  { %636 = vmatpush1.bf16.msra.mxu1 %v635_v50  ;;  %v212_v8 = vld [vmem:[#allocation4 + $0x4c8] sm:$0xff]  ;;  %v214_v9 = vld [vmem:[#allocation4 + $0x4d8] sm:$0xff]  ;;  %v771_v11 = vpack.c.bf16 %v209_v5, %v207_v3  ;;  %v645_v12 = vpack.c.bf16 %v86_v7, %v84_v6  ;;  %v83_v13 = vld [vmem:[#allocation4 + $0xc0] sm:$0xff] }
  0x47   :  { %764 = vmatpush1.bf16.msra.mxu0 %v763_v51  ;;  %638 = vmatprep.subr.bf16.mxu1 %v637_v52  ;;  %v85_v14 = vld [vmem:[#allocation4 + $0xd0] sm:$0xff]  ;;  %v211_v15 = vld [vmem:[#allocation4 + $0x4c0] sm:$0xff]  ;;  %v773_v16 = vpack.c.bf16 %v214_v9, %v212_v8  ;;  %v88_v18 = vld [vmem:[#allocation4 + $0xe8] sm:$0xff] }
  0x48   :  { %766 = vmatprep.subr.bf16.mxu0 %v765_v56  ;;  %v213_v17 = vld [vmem:[#allocation4 + $0x4d0] sm:$0xff]  ;;  %v90_v19 = vld [vmem:[#allocation4 + $0xf8] sm:$0xff]  ;;  %v216_v20 = vld [vmem:[#allocation4 + $0x4e8] sm:$0xff]  ;;  %v647_v22 = vpack.c.bf16 %v85_v14, %v83_v13 }
  0x49   :  { %v218_v21 = vld [vmem:[#allocation4 + $0x4f8] sm:$0xff]  ;;  %v775_v23 = vpack.c.bf16 %v213_v17, %v211_v15  ;;  %v649_v24 = vpack.c.bf16 %v90_v19, %v88_v18  ;;  %v87_v25 = vld [vmem:[#allocation4 + $0xe0] sm:$0xff]  ;;  %v89_v26 = vld [vmem:[#allocation4 + $0xf0] sm:$0xff] }
  0x4a   :  { %640 = vmatpush1.bf16.msra.mxu1 %v639_v62  ;;  %v215_v27 = vld [vmem:[#allocation4 + $0x4e0] sm:$0xff]  ;;  %v777_v28 = vpack.c.bf16 %v218_v21, %v216_v20  ;;  %v217_v29 = vld [vmem:[#allocation4 + $0x4f0] sm:$0xff]  ;;  %v92_v30 = vld [vmem:[#allocation4 + $0x108] sm:$0xff]  ;;  %v651_v34 = vpack.c.bf16 %v89_v26, %v87_v25 }
  0x4b   :  { %768 = vmatpush1.bf16.msra.mxu0 %v767_v63  ;;  %642 = vmatprep.subr.bf16.mxu1 %v641_v0  ;;  %v94_v31 = vld [vmem:[#allocation4 + $0x118] sm:$0xff]  ;;  %v220_v32 = vld [vmem:[#allocation4 + $0x508] sm:$0xff]  ;;  %v779_v35 = vpack.c.bf16 %v217_v29, %v215_v27  ;;  %v91_v37 = vld [vmem:[#allocation4 + $0x100] sm:$0xff] }
  0x4c   :  { %770 = vmatprep.subr.bf16.mxu0 %v769_v4  ;;  %v222_v33 = vld [vmem:[#allocation4 + $0x518] sm:$0xff]  ;;  %v653_v36 = vpack.c.bf16 %v94_v31, %v92_v30  ;;  %v93_v38 = vld [vmem:[#allocation4 + $0x110] sm:$0xff]  ;;  %v219_v39 = vld [vmem:[#allocation4 + $0x500] sm:$0xff] }
  0x4d   :  { %v781_v40 = vpack.c.bf16 %v222_v33, %v220_v32  ;;  %v221_v41 = vld [vmem:[#allocation4 + $0x510] sm:$0xff]  ;;  %v96_v42 = vld [vmem:[#allocation4 + $0x128] sm:$0xff]  ;;  %v98_v43 = vld [vmem:[#allocation4 + $0x138] sm:$0xff]  ;;  %v655_v46 = vpack.c.bf16 %v93_v38, %v91_v37 }
  0x4e   :  { %644 = vmatpush1.bf16.msra.mxu1 %v643_v10  ;;  %v224_v44 = vld [vmem:[#allocation4 + $0x528] sm:$0xff]  ;;  %v226_v45 = vld [vmem:[#allocation4 + $0x538] sm:$0xff]  ;;  %v783_v47 = vpack.c.bf16 %v221_v41, %v219_v39  ;;  %v657_v48 = vpack.c.bf16 %v98_v43, %v96_v42  ;;  %v95_v49 = vld [vmem:[#allocation4 + $0x120] sm:$0xff] }
  0x4f   :  { %772 = vmatpush1.bf16.msra.mxu0 %v771_v11  ;;  %646 = vmatprep.subr.bf16.mxu1 %v645_v12  ;;  %v97_v50 = vld [vmem:[#allocation4 + $0x130] sm:$0xff]  ;;  %v223_v51 = vld [vmem:[#allocation4 + $0x520] sm:$0xff]  ;;  %v785_v52 = vpack.c.bf16 %v226_v45, %v224_v44  ;;  %v100_v54 = vld [vmem:[#allocation4 + $0x148] sm:$0xff] }
  0x50   :  { %774 = vmatprep.subr.bf16.mxu0 %v773_v16  ;;  %v225_v53 = vld [vmem:[#allocation4 + $0x530] sm:$0xff]  ;;  %v102_v55 = vld [vmem:[#allocation4 + $0x158] sm:$0xff]  ;;  %v228_v56 = vld [vmem:[#allocation4 + $0x548] sm:$0xff]  ;;  %v659_v58 = vpack.c.bf16 %v97_v50, %v95_v49 }
  0x51   :  { %v230_v57 = vld [vmem:[#allocation4 + $0x558] sm:$0xff]  ;;  %v787_v59 = vpack.c.bf16 %v225_v53, %v223_v51  ;;  %v661_v60 = vpack.c.bf16 %v102_v55, %v100_v54  ;;  %v99_v61 = vld [vmem:[#allocation4 + $0x140] sm:$0xff]  ;;  %v101_v62 = vld [vmem:[#allocation4 + $0x150] sm:$0xff] }
  0x52   :  { %648 = vmatpush1.bf16.msra.mxu1 %v647_v22  ;;  %v227_v63 = vld [vmem:[#allocation4 + $0x540] sm:$0xff]  ;;  %v789_v0 = vpack.c.bf16 %v230_v57, %v228_v56  ;;  %v229_v1 = vld [vmem:[#allocation4 + $0x550] sm:$0xff]  ;;  %v104_v2 = vld [vmem:[#allocation4 + $0x168] sm:$0xff]  ;;  %v663_v6 = vpack.c.bf16 %v101_v62, %v99_v61 }
  0x53   :  { %776 = vmatpush1.bf16.msra.mxu0 %v775_v23  ;;  %650 = vmatprep.subr.bf16.mxu1 %v649_v24  ;;  %v106_v3 = vld [vmem:[#allocation4 + $0x178] sm:$0xff]  ;;  %v232_v4 = vld [vmem:[#allocation4 + $0x568] sm:$0xff]  ;;  %v103_v7 = vld [vmem:[#allocation4 + $0x160] sm:$0xff]  ;;  %v791_v8 = vpack.c.bf16 %v229_v1, %v227_v63 }
  0x54   :  { %778 = vmatprep.subr.bf16.mxu0 %v777_v28  ;;  %v234_v5 = vld [vmem:[#allocation4 + $0x578] sm:$0xff]  ;;  %v665_v9 = vpack.c.bf16 %v106_v3, %v104_v2  ;;  %v105_v10 = vld [vmem:[#allocation4 + $0x170] sm:$0xff]  ;;  %v231_v11 = vld [vmem:[#allocation4 + $0x560] sm:$0xff] }
  0x55   :  { %v233_v12 = vld [vmem:[#allocation4 + $0x570] sm:$0xff]  ;;  %v793_v13 = vpack.c.bf16 %v234_v5, %v232_v4  ;;  %v108_v14 = vld [vmem:[#allocation4 + $0x188] sm:$0xff]  ;;  %v110_v15 = vld [vmem:[#allocation4 + $0x198] sm:$0xff]  ;;  %v667_v20 = vpack.c.bf16 %v105_v10, %v103_v7 }
  0x56   :  { %652 = vmatpush1.bf16.msra.mxu1 %v651_v34  ;;  %v52_v16 = vld [vmem:[#allocation2 + $0x8] sm:$0xff]  ;;  %v238_v18 = vld [vmem:[#allocation4 + $0x598] sm:$0xff]  ;;  %v795_v21 = vpack.c.bf16 %v233_v12, %v231_v11  ;;  %v669_v22 = vpack.c.bf16 %v110_v15, %v108_v14  ;;  %v107_v23 = vld [vmem:[#allocation4 + $0x180] sm:$0xff] }
  0x57   :  { %780 = vmatpush1.bf16.msra.mxu0 %v779_v35  ;;  %654 = vmatprep.subr.bf16.mxu1 %v653_v36  ;;  %v236_v17 = vld [vmem:[#allocation4 + $0x588] sm:$0xff]  ;;  %v109_v24 = vld [vmem:[#allocation4 + $0x190] sm:$0xff]  ;;  %v235_v25 = vld [vmem:[#allocation4 + $0x580] sm:$0xff] }
  0x58   :  { %782 = vmatprep.subr.bf16.mxu0 %v781_v40  ;;  %391 = vmatprep.mubr.f32.mxu1 %v52_v16  ;;  %v56_v19 = vld [vmem:[#allocation2 + $0x28] sm:$0xff]  ;;  %v797_v26 = vpack.c.bf16 %v238_v18, %v236_v17  ;;  %v237_v27 = vld [vmem:[#allocation4 + $0x590] sm:$0xff]  ;;  %v114_v29 = vld [vmem:[#allocation4 + $0x1b8] sm:$0xff]  ;;  %v671_v32 = vpack.c.bf16 %v109_v24, %v107_v23 }
  0x59   :  { %533 = vmatprep.mubr.f32.mxu0 %v56_v19  ;;  %v112_v28 = vld [vmem:[#allocation4 + $0x1a8] sm:$0xff]  ;;  %v242_v31 = vld [vmem:[#allocation4 + $0x5b8] sm:$0xff]  ;;  %v799_v33 = vpack.c.bf16 %v237_v27, %v235_v25  ;;  %v111_v35 = vld [vmem:[#allocation4 + $0x1a0] sm:$0xff] }
  0x5a   :  { %656 = vmatpush1.bf16.msra.mxu1 %v655_v46  ;;  %v240_v30 = vld [vmem:[#allocation4 + $0x5a8] sm:$0xff]  ;;  %v673_v34 = vpack.c.bf16 %v114_v29, %v112_v28  ;;  %v113_v36 = vld [vmem:[#allocation4 + $0x1b0] sm:$0xff]  ;;  %v239_v37 = vld [vmem:[#allocation4 + $0x5a0] sm:$0xff] }
  0x5b   :  { %784 = vmatpush1.bf16.msra.mxu0 %v783_v47  ;;  %658 = vmatprep.subr.bf16.mxu1 %v657_v48  ;;  %v801_v38 = vpack.c.bf16 %v242_v31, %v240_v30  ;;  %v241_v39 = vld [vmem:[#allocation4 + $0x5b0] sm:$0xff]  ;;  %v116_v40 = vld [vmem:[#allocation4 + $0x1c8] sm:$0xff]  ;;  %v118_v41 = vld [vmem:[#allocation4 + $0x1d8] sm:$0xff]  ;;  %v675_v44 = vpack.c.bf16 %v113_v36, %v111_v35 }
  0x5c   :  { %786 = vmatprep.subr.bf16.mxu0 %v785_v52  ;;  %v244_v42 = vld [vmem:[#allocation4 + $0x5c8] sm:$0xff]  ;;  %v246_v43 = vld [vmem:[#allocation4 + $0x5d8] sm:$0xff]  ;;  %v803_v45 = vpack.c.bf16 %v241_v39, %v239_v37  ;;  %v677_v46 = vpack.c.bf16 %v118_v41, %v116_v40  ;;  %v115_v47 = vld [vmem:[#allocation4 + $0x1c0] sm:$0xff] }
  0x5d   :  { %v117_v48 = vld [vmem:[#allocation4 + $0x1d0] sm:$0xff]  ;;  %v243_v49 = vld [vmem:[#allocation4 + $0x5c0] sm:$0xff]  ;;  %v805_v50 = vpack.c.bf16 %v246_v43, %v244_v42  ;;  %v120_v52 = vld [vmem:[#allocation4 + $0x1e8] sm:$0xff] }
  0x5e   :  { %660 = vmatpush1.bf16.msra.mxu1 %v659_v58  ;;  %v245_v51 = vld [vmem:[#allocation4 + $0x5d0] sm:$0xff]  ;;  %v122_v53 = vld [vmem:[#allocation4 + $0x1f8] sm:$0xff]  ;;  %v248_v54 = vld [vmem:[#allocation4 + $0x5e8] sm:$0xff]  ;;  %v679_v56 = vpack.c.bf16 %v117_v48, %v115_v47 }
  0x5f   :  { %788 = vmatpush1.bf16.msra.mxu0 %v787_v59  ;;  %662 = vmatprep.subr.bf16.mxu1 %v661_v60  ;;  %v250_v55 = vld [vmem:[#allocation4 + $0x5f8] sm:$0xff]  ;;  %v807_v57 = vpack.c.bf16 %v245_v51, %v243_v49  ;;  %v681_v58 = vpack.c.bf16 %v122_v53, %v120_v52  ;;  %v119_v59 = vld [vmem:[#allocation4 + $0x1e0] sm:$0xff]  ;;  %v121_v60 = vld [vmem:[#allocation4 + $0x1f0] sm:$0xff] }
  0x60   :  { %790 = vmatprep.subr.bf16.mxu0 %v789_v0  ;;  %v247_v61 = vld [vmem:[#allocation4 + $0x5e0] sm:$0xff]  ;;  %v809_v62 = vpack.c.bf16 %v250_v55, %v248_v54  ;;  %v249_v63 = vld [vmem:[#allocation4 + $0x5f0] sm:$0xff]  ;;  %v124_v0 = vld [vmem:[#allocation4 + $0x208] sm:$0xff]  ;;  %v683_v4 = vpack.c.bf16 %v121_v60, %v119_v59 }
  0x61   :  { %v126_v1 = vld [vmem:[#allocation4 + $0x218] sm:$0xff]  ;;  %v252_v2 = vld [vmem:[#allocation4 + $0x608] sm:$0xff]  ;;  %v811_v5 = vpack.c.bf16 %v249_v63, %v247_v61  ;;  %v123_v7 = vld [vmem:[#allocation4 + $0x200] sm:$0xff] }
  0x62   :  { %664 = vmatpush1.bf16.msra.mxu1 %v663_v6  ;;  %v254_v3 = vld [vmem:[#allocation4 + $0x618] sm:$0xff]  ;;  %v685_v6 = vpack.c.bf16 %v126_v1, %v124_v0  ;;  %v253_v11 = vld [vmem:[#allocation4 + $0x610] sm:$0xff]  ;;  %v128_v12 = vld [vmem:[#allocation4 + $0x228] sm:$0xff] }
  0x63   :  { %792 = vmatpush1.bf16.msra.mxu0 %v791_v8  ;;  %666 = vmatprep.subr.bf16.mxu1 %v665_v9  ;;  %v125_v8 = vld [vmem:[#allocation4 + $0x210] sm:$0xff]  ;;  %v251_v9 = vld [vmem:[#allocation4 + $0x600] sm:$0xff]  ;;  %v813_v10 = vpack.c.bf16 %v254_v3, %v252_v2  ;;  %v256_v14 = vld [vmem:[#allocation4 + $0x628] sm:$0xff] }
  0x64   :  { %794 = vmatprep.subr.bf16.mxu0 %v793_v13  ;;  %v130_v13 = vld [vmem:[#allocation4 + $0x238] sm:$0xff]  ;;  %v51_v16 = vld [vmem:[#allocation2] sm:$0xff]  ;;  %v687_v17 = vpack.c.bf16 %v125_v8, %v123_v7  ;;  %v815_v19 = vpack.c.bf16 %v253_v11, %v251_v9  ;;  %v257_v25 = vld [vmem:[#allocation4 + $0x630] sm:$0xff] }
  0x65   :  { %v258_v15 = vld [vmem:[#allocation4 + $0x638] sm:$0xff]  ;;  %v55_v18 = vld [vmem:[#allocation2 + $0x20] sm:$0xff]  ;;  %v260_v28 = vld [vmem:[#allocation4 + $0x648] sm:$0xff] }
  0x66   :  { %668 = vmatpush1.bf16.msra.mxu1 %v667_v20  ;;  %v689_v20 = vpack.c.bf16 %v130_v13, %v128_v12  ;;  %v255_v23 = vld [vmem:[#allocation4 + $0x620] sm:$0xff]  ;;  %v817_v24 = vpack.c.bf16 %v258_v15, %v256_v14  ;;  %v134_v27 = vld [vmem:[#allocation4 + $0x258] sm:$0xff]  ;;  %v261_v37 = vld [vmem:[#allocation4 + $0x650] sm:$0xff] }
  0x67   :  { %796 = vmatpush1.bf16.msra.mxu0 %v795_v21  ;;  %670 = vmatprep.subr.bf16.mxu1 %v669_v22  ;;  %v127_v21 = vld [vmem:[#allocation4 + $0x220] sm:$0xff]  ;;  %v129_v22 = vld [vmem:[#allocation4 + $0x230] sm:$0xff]  ;;  %v262_v29 = vld [vmem:[#allocation4 + $0x658] sm:$0xff]  ;;  %v819_v31 = vpack.c.bf16 %v257_v25, %v255_v23 }
  0x68   :  { %798 = vmatprep.subr.bf16.mxu0 %v797_v26  ;;  %v132_v26 = vld [vmem:[#allocation4 + $0x248] sm:$0xff]  ;;  %v691_v30 = vpack.c.bf16 %v129_v22, %v127_v21  ;;  %v259_v35 = vld [vmem:[#allocation4 + $0x640] sm:$0xff]  ;;  %v821_v36 = vpack.c.bf16 %v262_v29, %v260_v28  ;;  %v138_v39 = vld [vmem:[#allocation4 + $0x278] sm:$0xff] }
  0x69   :  { %v264_v40 = vld [vmem:[#allocation4 + $0x668] sm:$0xff]  ;;  %v266_v41 = vld [vmem:[#allocation4 + $0x678] sm:$0xff]  ;;  %v823_v43 = vpack.c.bf16 %v261_v37, %v259_v35  ;;  %v263_v47 = vld [vmem:[#allocation4 + $0x660] sm:$0xff] }
  0x6a   :  { %672 = vmatpush1.bf16.msra.mxu1 %v671_v32  ;;  %v693_v32 = vpack.c.bf16 %v134_v27, %v132_v26  ;;  %v825_v48 = vpack.c.bf16 %v266_v41, %v264_v40  ;;  %v265_v49 = vld [vmem:[#allocation4 + $0x670] sm:$0xff]  ;;  %v142_v51 = vld [vmem:[#allocation4 + $0x298] sm:$0xff]  ;;  %v268_v52 = vld [vmem:[#allocation4 + $0x688] sm:$0xff] }
  0x6b   :  { %800 = vmatpush1.bf16.msra.mxu0 %v799_v33  ;;  %674 = vmatprep.subr.bf16.mxu1 %v673_v34  ;;  %v131_v33 = vld [vmem:[#allocation4 + $0x240] sm:$0xff]  ;;  %v133_v34 = vld [vmem:[#allocation4 + $0x250] sm:$0xff]  ;;  %v270_v53 = vld [vmem:[#allocation4 + $0x698] sm:$0xff]  ;;  %v827_v55 = vpack.c.bf16 %v265_v49, %v263_v47 }
  0x6c   :  { %802 = vmatprep.subr.bf16.mxu0 %v801_v38  ;;  %v136_v38 = vld [vmem:[#allocation4 + $0x268] sm:$0xff]  ;;  %v695_v42 = vpack.c.bf16 %v133_v34, %v131_v33  ;;  %v267_v59 = vld [vmem:[#allocation4 + $0x680] sm:$0xff]  ;;  %v829_v60 = vpack.c.bf16 %v270_v53, %v268_v52  ;;  %v269_v61 = vld [vmem:[#allocation4 + $0x690] sm:$0xff] }
  0x6d   :  { %v146_v63 = vld [vmem:[#allocation4 + $0x2b8] sm:$0xff]  ;;  %v272_v0 = vld [vmem:[#allocation4 + $0x6a8] sm:$0xff]  ;;  %v831_v3 = vpack.c.bf16 %v269_v61, %v267_v59  ;;  %v271_v7 = vld [vmem:[#allocation4 + $0x6a0] sm:$0xff] }
  0x6e   :  { %676 = vmatpush1.bf16.msra.mxu1 %v675_v44  ;;  %v697_v44 = vpack.c.bf16 %v138_v39, %v136_v38  ;;  %v274_v1 = vld [vmem:[#allocation4 + $0x6b8] sm:$0xff]  ;;  %v273_v9 = vld [vmem:[#allocation4 + $0x6b0] sm:$0xff]  ;;  %v276_v12 = vld [vmem:[#allocation4 + $0x6c8] sm:$0xff] }
  0x6f   :  { %804 = vmatpush1.bf16.msra.mxu0 %v803_v45  ;;  %678 = vmatprep.subr.bf16.mxu1 %v677_v46  ;;  %v135_v45 = vld [vmem:[#allocation4 + $0x260] sm:$0xff]  ;;  %v137_v46 = vld [vmem:[#allocation4 + $0x270] sm:$0xff]  ;;  %v833_v8 = vpack.c.bf16 %v274_v1, %v272_v0  ;;  %v150_v11 = vld [vmem:[#allocation4 + $0x2d8] sm:$0xff] }
  0x70   :  { %806 = vmatprep.subr.bf16.mxu0 %v805_v50  ;;  %v140_v50 = vld [vmem:[#allocation4 + $0x288] sm:$0xff]  ;;  %v699_v54 = vpack.c.bf16 %v137_v46, %v135_v45  ;;  %v278_v13 = vld [vmem:[#allocation4 + $0x6d8] sm:$0xff]  ;;  %v147_v15 = vld [vmem:[#allocation4 + $0x2c0] sm:$0xff] }
  0x71   :  { %v837_v21 = vpack.c.bf16 %v278_v13, %v276_v12  ;;  %v152_v22 = vld [vmem:[#allocation4 + $0x2e8] sm:$0xff]  ;;  %v154_v23 = vld [vmem:[#allocation4 + $0x2f8] sm:$0xff]  ;;  %v279_v33 = vld [vmem:[#allocation4 + $0x6e0] sm:$0xff] }
  0x72   :  { %680 = vmatpush1.bf16.msra.mxu1 %v679_v56  ;;  %v701_v56 = vpack.c.bf16 %v142_v51, %v140_v50  ;;  %v280_v25 = vld [vmem:[#allocation4 + $0x6e8] sm:$0xff]  ;;  %v282_v26 = vld [vmem:[#allocation4 + $0x6f8] sm:$0xff]  ;;  %v281_v35 = vld [vmem:[#allocation4 + $0x6f0] sm:$0xff] }
  0x73   :  { %808 = vmatpush1.bf16.msra.mxu0 %v807_v57  ;;  %682 = vmatprep.subr.bf16.mxu1 %v681_v58  ;;  %v139_v57 = vld [vmem:[#allocation4 + $0x280] sm:$0xff]  ;;  %v141_v58 = vld [vmem:[#allocation4 + $0x290] sm:$0xff]  ;;  %v58_v27 = vld [vmem:[#allocation2 + $0x38] sm:$0xff]  ;;  %v841_v34 = vpack.c.bf16 %v282_v26, %v280_v25  ;;  %v843_v41 = vpack.c.bf16 %v281_v35, %v279_v33 }
  0x74   :  { %810 = vmatprep.subr.bf16.mxu0 %v809_v62  ;;  %v144_v62 = vld [vmem:[#allocation4 + $0x2a8] sm:$0xff]  ;;  %v703_v2 = vpack.c.bf16 %v141_v58, %v139_v57  ;;  %v158_v37 = vld [vmem:[#allocation4 + $0x318] sm:$0xff]  ;;  %v283_v45 = vld [vmem:[#allocation4 + $0x700] sm:$0xff] }
  0x75   :  { %v284_v38 = vld [vmem:[#allocation4 + $0x708] sm:$0xff]  ;;  %v286_v39 = vld [vmem:[#allocation4 + $0x718] sm:$0xff]  ;;  %v285_v47 = vld [vmem:[#allocation4 + $0x710] sm:$0xff] }
  0x76   :  { %684 = vmatpush1.bf16.msra.mxu1 %v683_v4  ;;  %v705_v4 = vpack.c.bf16 %v146_v63, %v144_v62  ;;  %v845_v46 = vpack.c.bf16 %v286_v39, %v284_v38  ;;  %v162_v49 = vld [vmem:[#allocation4 + $0x338] sm:$0xff]  ;;  %v288_v50 = vld [vmem:[#allocation4 + $0x728] sm:$0xff]  ;;  %v847_v53 = vpack.c.bf16 %v285_v47, %v283_v45  ;;  %v287_v57 = vld [vmem:[#allocation4 + $0x720] sm:$0xff] }
  0x77   :  { %812 = vmatpush1.bf16.msra.mxu0 %v811_v5  ;;  %686 = vmatprep.subr.bf16.mxu1 %v685_v6  ;;  %v143_v5 = vld [vmem:[#allocation4 + $0x2a0] sm:$0xff]  ;;  %v145_v6 = vld [vmem:[#allocation4 + $0x2b0] sm:$0xff]  ;;  %v290_v51 = vld [vmem:[#allocation4 + $0x738] sm:$0xff] }
  0x78   :  { %814 = vmatprep.subr.bf16.mxu0 %v813_v10  ;;  %v148_v10 = vld [vmem:[#allocation4 + $0x2c8] sm:$0xff]  ;;  %v707_v14 = vpack.c.bf16 %v145_v6, %v143_v5  ;;  %v849_v58 = vpack.c.bf16 %v290_v51, %v288_v50  ;;  %v289_v59 = vld [vmem:[#allocation4 + $0x730] sm:$0xff]  ;;  %v166_v61 = vld [vmem:[#allocation4 + $0x358] sm:$0xff] }
  0x79   :  { %392 = vmatmul.mubr.f32.vlgmr.msra.gmra.mrb[0].mxu1 %v51_v16  ;;  %v835_v16 = vpack.c.bf16 %v273_v9, %v271_v7  ;;  %v292_v62 = vld [vmem:[#allocation4 + $0x748] sm:$0xff]  ;;  %v294_v63 = vld [vmem:[#allocation4 + $0x758] sm:$0xff]  ;;  %v851_v1 = vpack.c.bf16 %v289_v59, %v287_v57  ;;  %v291_v5 = vld [vmem:[#allocation4 + $0x740] sm:$0xff] }
  0x7a   :  { %688 = vmatpush1.bf16.msra.mxu1 %v687_v17  ;;  %534 = vmatmul.mubr.f32.vlgmr.msra.gmra.mrb[0].mxu0 %v55_v18  ;;  %v709_v17 = vpack.c.bf16 %v150_v11, %v148_v10  ;;  %v149_v18 = vld [vmem:[#allocation4 + $0x2d0] sm:$0xff]  ;;  %v853_v6 = vpack.c.bf16 %v294_v63, %v292_v62  ;;  %v170_v9 = vld [vmem:[#allocation4 + $0x378] sm:$0xff]  ;;  %v296_v10 = vld [vmem:[#allocation4 + $0x768] sm:$0xff] }
  0x7b   :  { %816 = vmatpush1.bf16.msra.mxu0 %v815_v19  ;;  %690 = vmatprep.subr.bf16.mxu1 %v689_v20  ;;  %v275_v19 = vld [vmem:[#allocation4 + $0x6c0] sm:$0xff]  ;;  %v277_v20 = vld [vmem:[#allocation4 + $0x6d0] sm:$0xff]  ;;  %v711_v28 = vpack.c.bf16 %v149_v18, %v147_v15  ;;  %v298_v11 = vld [vmem:[#allocation4 + $0x778] sm:$0xff] }
  0x7c   :  { %818 = vmatprep.subr.bf16.mxu0 %v817_v24  ;;  %v54_v24 = vld [vmem:[#allocation2 + $0x18] sm:$0xff]  ;;  %604 = vmatprep.mubr.f32.mxu0 %v58_v27  ;;  %v839_v29 = vpack.c.bf16 %v277_v20, %v275_v19  ;;  %v293_v7 = vld [vmem:[#allocation4 + $0x750] sm:$0xff]  ;;  %v167_v15 = vld [vmem:[#allocation4 + $0x360] sm:$0xff]  ;;  %v857_v18 = vpack.c.bf16 %v298_v11, %v296_v10 }
  0x7d   :  { %462 = vmatprep.mubr.f32.mxu1 %v54_v24  ;;  %v855_v13 = vpack.c.bf16 %v293_v7, %v291_v5  ;;  %v297_v19 = vld [vmem:[#allocation4 + $0x770] sm:$0xff]  ;;  %v172_v20 = vld [vmem:[#allocation4 + $0x388] sm:$0xff]  ;;  %v171_v27 = vld [vmem:[#allocation4 + $0x380] sm:$0xff] }
  0x7e   :  { %692 = vmatpush1.bf16.msra.mxu1 %v691_v30  ;;  %v713_v30 = vpack.c.bf16 %v154_v23, %v152_v22  ;;  %v300_v22 = vld [vmem:[#allocation4 + $0x788] sm:$0xff]  ;;  %v302_v23 = vld [vmem:[#allocation4 + $0x798] sm:$0xff]  ;;  %v175_v39 = vld [vmem:[#allocation4 + $0x3a0] sm:$0xff] }
  0x7f   :  { %820 = vmatpush1.bf16.msra.mxu0 %v819_v31  ;;  %694 = vmatprep.subr.bf16.mxu1 %v693_v32  ;;  %v151_v31 = vld [vmem:[#allocation4 + $0x2e0] sm:$0xff]  ;;  %v153_v32 = vld [vmem:[#allocation4 + $0x2f0] sm:$0xff]  ;;  %v178_v33 = vld [vmem:[#allocation4 + $0x3b8] sm:$0xff] }
  0x80   :  { %822 = vmatprep.subr.bf16.mxu0 %v821_v36  ;;  %v156_v36 = vld [vmem:[#allocation4 + $0x308] sm:$0xff]  ;;  %v715_v40 = vpack.c.bf16 %v153_v32, %v151_v31  ;;  %v301_v31 = vld [vmem:[#allocation4 + $0x790] sm:$0xff]  ;;  %v306_v35 = vld [vmem:[#allocation4 + $0x7b8] sm:$0xff] }
  0x81   :  { %v176_v32 = vld [vmem:[#allocation4 + $0x3a8] sm:$0xff]  ;;  %v182_v45 = vld [vmem:[#allocation4 + $0x3d8] sm:$0xff]  ;;  %v179_v51 = vld [vmem:[#allocation4 + $0x3c0] sm:$0xff] }
  0x82   :  { %696 = vmatpush1.bf16.msra.mxu1 %v695_v42  ;;  %v717_v42 = vpack.c.bf16 %v158_v37, %v156_v36  ;;  %v737_v38 = vpack.c.bf16 %v178_v33, %v176_v32  ;;  %v310_v47 = vld [vmem:[#allocation4 + $0x7d8] sm:$0xff]  ;;  %v183_v63 = vld [vmem:[#allocation4 + $0x3e0] sm:$0xff]  ;;  %v57_v7 = vld [vmem:[#allocation2 + $0x30] sm:$0xff] }
  0x83   :  { %824 = vmatpush1.bf16.msra.mxu0 %v823_v43  ;;  %698 = vmatprep.subr.bf16.mxu1 %v697_v44  ;;  %v155_v43 = vld [vmem:[#allocation4 + $0x300] sm:$0xff]  ;;  %v157_v44 = vld [vmem:[#allocation4 + $0x310] sm:$0xff]  ;;  %v186_v57 = vld [vmem:[#allocation4 + $0x3f8] sm:$0xff] }
  0x84   :  { %826 = vmatprep.subr.bf16.mxu0 %v825_v48  ;;  %v160_v48 = vld [vmem:[#allocation4 + $0x328] sm:$0xff]  ;;  %v719_v52 = vpack.c.bf16 %v157_v44, %v155_v43  ;;  %v305_v43 = vld [vmem:[#allocation4 + $0x7b0] sm:$0xff]  ;;  %v314_v59 = vld [vmem:[#allocation4 + $0x7f8] sm:$0xff] }
  0x85   :  { %v180_v44 = vld [vmem:[#allocation4 + $0x3c8] sm:$0xff]  ;;  %v315_v11 = vld [vmem:[#allocation6] sm:$0x3] }
  0x86   :  { %700 = vmatpush1.bf16.msra.mxu1 %v699_v54  ;;  %v721_v54 = vpack.c.bf16 %v162_v49, %v160_v48  ;;  %v741_v50 = vpack.c.bf16 %v182_v45, %v180_v44 }
  0x87   :  { %828 = vmatpush1.bf16.msra.mxu0 %v827_v55  ;;  %702 = vmatprep.subr.bf16.mxu1 %v701_v56  ;;  %v159_v55 = vld [vmem:[#allocation4 + $0x320] sm:$0xff]  ;;  %v161_v56 = vld [vmem:[#allocation4 + $0x330] sm:$0xff] }
  0x88   :  { %830 = vmatprep.subr.bf16.mxu0 %v829_v60  ;;  %v164_v60 = vld [vmem:[#allocation4 + $0x348] sm:$0xff]  ;;  %v723_v0 = vpack.c.bf16 %v161_v56, %v159_v55  ;;  %v309_v55 = vld [vmem:[#allocation4 + $0x7d0] sm:$0xff] }
  0x89   :  { %v184_v56 = vld [vmem:[#allocation4 + $0x3e8] sm:$0xff] }
  0x8a   :  { %704 = vmatpush1.bf16.msra.mxu1 %v703_v2  ;;  %v725_v2 = vpack.c.bf16 %v166_v61, %v164_v60  ;;  %v745_v62 = vpack.c.bf16 %v186_v57, %v184_v56 }
  0x8b   :  { %832 = vmatpush1.bf16.msra.mxu0 %v831_v3  ;;  %706 = vmatprep.subr.bf16.mxu1 %v705_v4  ;;  %v163_v3 = vld [vmem:[#allocation4 + $0x340] sm:$0xff]  ;;  %v165_v4 = vld [vmem:[#allocation4 + $0x350] sm:$0xff] }
  0x8c   :  { %834 = vmatprep.subr.bf16.mxu0 %v833_v8  ;;  %v168_v8 = vld [vmem:[#allocation4 + $0x368] sm:$0xff]  ;;  %v727_v12 = vpack.c.bf16 %v165_v4, %v163_v3  ;;  %v313_v3 = vld [vmem:[#allocation4 + $0x7f0] sm:$0xff] }
  0x8e   :  { %708 = vmatpush1.bf16.msra.mxu1 %v707_v14  ;;  %v729_v14 = vpack.c.bf16 %v170_v9, %v168_v8  ;;  %v317_v8 = vlaneseq }
  0x8f   :  { %836 = vmatpush1.bf16.msra.mxu0 %v835_v16  ;;  %710 = vmatprep.subr.bf16.mxu1 %v709_v17  ;;  %v169_v16 = vld [vmem:[#allocation4 + $0x370] sm:$0xff]  ;;  %v295_v17 = vld [vmem:[#allocation4 + $0x760] sm:$0xff] }
  0x90   :  { %838 = vmatprep.subr.bf16.mxu0 %v837_v21  ;;  %v174_v21 = vld [vmem:[#allocation4 + $0x398] sm:$0xff]  ;;  %v731_v24 = vpack.c.bf16 %v169_v16, %v167_v15  ;;  %v859_v25 = vpack.c.bf16 %v297_v19, %v295_v17  ;;  %v318_v9 = vshrl.u32 %v317_v8, 7 }
  0x91   :  { %v733_v26 = vpack.c.bf16 %v174_v21, %v172_v20 }
  0x92   :  { %712 = vmatpush1.bf16.msra.mxu1 %v711_v28  ;;  %v173_v28 = vld [vmem:[#allocation4 + $0x390] sm:$0xff]  ;;  %v319_v10 = vsub.s32 0, %v318_v9 }
  0x93   :  { %840 = vmatpush1.bf16.msra.mxu0 %v839_v29  ;;  %714 = vmatprep.subr.bf16.mxu1 %v713_v30  ;;  %v299_v29 = vld [vmem:[#allocation4 + $0x780] sm:$0xff]  ;;  %v861_v30 = vpack.c.bf16 %v302_v23, %v300_v22  ;;  %v735_v36 = vpack.c.bf16 %v173_v28, %v171_v27 }
  0x94   :  { %842 = vmatprep.subr.bf16.mxu0 %v841_v34  ;;  %v304_v34 = vld [vmem:[#allocation4 + $0x7a8] sm:$0xff]  ;;  %v863_v37 = vpack.c.bf16 %v301_v31, %v299_v29 }
  0x96   :  { %716 = vmatpush1.bf16.msra.mxu1 %v715_v40  ;;  %v177_v40 = vld [vmem:[#allocation4 + $0x3b0] sm:$0xff] }
  0x97   :  { %844 = vmatpush1.bf16.msra.mxu0 %v843_v41  ;;  %718 = vmatprep.subr.bf16.mxu1 %v717_v42  ;;  %v303_v41 = vld [vmem:[#allocation4 + $0x7a0] sm:$0xff]  ;;  %v865_v42 = vpack.c.bf16 %v306_v35, %v304_v34  ;;  %v739_v48 = vpack.c.bf16 %v177_v40, %v175_v39 }
  0x98   :  { %846 = vmatprep.subr.bf16.mxu0 %v845_v46  ;;  %v308_v46 = vld [vmem:[#allocation4 + $0x7c8] sm:$0xff]  ;;  %v867_v49 = vpack.c.bf16 %v305_v43, %v303_v41 }
  0x9a   :  { %720 = vmatpush1.bf16.msra.mxu1 %v719_v52  ;;  %v181_v52 = vld [vmem:[#allocation4 + $0x3d0] sm:$0xff] }
  0x9b   :  { %848 = vmatpush1.bf16.msra.mxu0 %v847_v53  ;;  %722 = vmatprep.subr.bf16.mxu1 %v721_v54  ;;  %v307_v53 = vld [vmem:[#allocation4 + $0x7c0] sm:$0xff]  ;;  %v869_v54 = vpack.c.bf16 %v310_v47, %v308_v46  ;;  %v743_v60 = vpack.c.bf16 %v181_v52, %v179_v51 }
  0x9c   :  { %850 = vmatprep.subr.bf16.mxu0 %v849_v58  ;;  %v312_v58 = vld [vmem:[#allocation4 + $0x7e8] sm:$0xff]  ;;  %v871_v61 = vpack.c.bf16 %v309_v55, %v307_v53 }
  0x9e   :  { %724 = vmatpush1.bf16.msra.mxu1 %v723_v0  ;;  %v185_v0 = vld [vmem:[#allocation4 + $0x3f0] sm:$0xff] }
  0x9f   :  { %852 = vmatpush1.bf16.msra.mxu0 %v851_v1  ;;  %726 = vmatprep.subr.bf16.mxu1 %v725_v2  ;;  %v873_v1 = vpack.c.bf16 %v314_v59, %v312_v58  ;;  %v311_v2 = vld [vmem:[#allocation4 + $0x7e0] sm:$0xff]  ;;  %v747_v4 = vpack.c.bf16 %v185_v0, %v183_v63 }
  0xa0   :  { %854 = vmatprep.subr.bf16.mxu0 %v853_v6  ;;  %v875_v5 = vpack.c.bf16 %v313_v3, %v311_v2  ;;  %v53_v6 = vld [vmem:[#allocation2 + $0x10] sm:$0xff] }
  0xa2   :  { %728 = vmatpush1.bf16.msra.mxu1 %v727_v12  ;;  %v323_v12 = vsub.s32 1, %v318_v9 }
  0xa3   :  { %856 = vmatpush1.bf16.msra.mxu0 %v855_v13  ;;  %730 = vmatprep.subr.bf16.mxu1 %v729_v14  ;;  %v320_v13 = vrot.slane %v315_v11, %v319_v10 }
  0xa4   :  { %858 = vmatprep.subr.bf16.mxu0 %v857_v18  ;;  %v324_v14 = vrot.slane %v315_v11, %v323_v12 }
  0xa6   :  { %732 = vmatpush1.bf16.msra.mxu1 %v731_v24 }
  0xa7   :  { %860 = vmatpush1.bf16.msra.mxu0 %v859_v25  ;;  %734 = vmatprep.subr.bf16.mxu1 %v733_v26 }
  0xa8   :  { %862 = vmatprep.subr.bf16.mxu0 %v861_v30 }
  0xaa   :  { %736 = vmatpush1.bf16.msra.mxu1 %v735_v36 }
  0xab   :  { %864 = vmatpush1.bf16.msra.mxu0 %v863_v37  ;;  %738 = vmatprep.subr.bf16.mxu1 %v737_v38 }
  0xac   :  { %866 = vmatprep.subr.bf16.mxu0 %v865_v42 }
  0xae   :  { %740 = vmatpush1.bf16.msra.mxu1 %v739_v48 }
  0xaf   :  { %868 = vmatpush1.bf16.msra.mxu0 %v867_v49  ;;  %742 = vmatprep.subr.bf16.mxu1 %v741_v50 }
  0xb0   :  { %870 = vmatprep.subr.bf16.mxu0 %v869_v54 }
  0xb2   :  { %744 = vmatpush1.bf16.msra.mxu1 %v743_v60 }
  0xb3   :  { %872 = vmatpush1.bf16.msra.mxu0 %v871_v61  ;;  %746 = vmatprep.subr.bf16.mxu1 %v745_v62 }
  0xb4   :  { %874 = vmatprep.subr.bf16.mxu0 %v873_v1 }
  0xb6   :  { %748 = vmatpush1.bf16.msra.mxu1 %v747_v4 }
  0xb7   :  { %876 = vmatpush1.bf16.msra.mxu0 %v875_v5 }
  0xb9   :  { %463 = vmatmul.mubr.f32.vlgmr.msra.gmra.mrb[0].mxu1 %v53_v6 }
  0xba   :  { %605 = vmatmul.mubr.f32.vlgmr.msra.gmra.mrb[0].mxu0 %v57_v7 }
 0x18c   :  { %v464_v15 = vpop.f32.mrb[0].mxu1 }
 0x18d   :  { %v877_v16 = vadd.f32 %v464_v15, %v320_v13  ;;  %v606_v17 = vpop.f32.mrb[0].mxu0  ;;  %v466_v18 = vpop.f32.mrb[1].mxu1 }
 0x18e   :  { %v879_v19 = vadd.f32 %v466_v18, %v324_v14  ;;  %v608_v20 = vpop.f32.mrb[1].mxu0 }
 0x18f   :  { %v878_v21 = vadd.f32 %v877_v16, %v606_v17 }
 0x190   :  { %v880_v22 = vadd.f32 %v879_v19, %v608_v20 }
 0x191   :  { %v611_v23 = vmax.f32 %v878_v21, 0.0 }
 0x192   :  { %v612_v24 = vmax.f32 %v880_v22, 0.0 }
 0x193   :  { %613 = vst [vmem:[%s1030_s3] sm:$0xff] %v611_v23 }
 0x194   :  { %614 = vst [vmem:[%s1030_s3 + $0x8] sm:$0xff] %v612_v24 }
 0x195   :  { %619 = vsyncpa [#allocation3], 1 }
 0x196   :  { %620 = vsyncpa [#allocation5], 1 }

</bundles_post_ra>
